<compile_context>
chip_gen: v7x
topology: tpu7x:2x2x1
jax: 0.10.0
libtpu: 0.0.40
codegen_flags: <defaults>
</compile_context>

<pallas_src>
import math
from functools import partial

import jax
import jax.numpy as jnp
from jax.experimental import pallas as pl
from jax.experimental.pallas import tpu as pltpu


# ----------------------------- model config -------------------------------
HIDDEN = 32
N_HEADS = 2
HEAD_DIM = HIDDEN // N_HEADS
FFN = 64
N_LAYERS = 2
VOCAB = 100
MAX_POS = 64
LN_EPS = 1e-12
MM_DTYPE = jnp.bfloat16       # MXU input dtype (accumulation stays f32)


# ------------------------- fused encoder kernel ---------------------------

def _layernorm(x, gamma, beta):
    """f32 LayerNorm over the last axis (residual already added by caller)."""
    mu = jnp.mean(x, axis=-1, keepdims=True)
    xc = x - mu
    var = jnp.mean(xc * xc, axis=-1, keepdims=True)
    return xc * jax.lax.rsqrt(var + LN_EPS) * gamma + beta


def _gelu_exact(x):
    # HF BERT default: exact erf GELU (goes to the EUP transcendental port).
    return 0.5 * x * (1.0 + jax.lax.erf(x * 0.7071067811865476))


def _encoder_kernel(emb_ref, eg_ref, eb_ref, mask_ref,
                    wqkv_ref, bqkv_ref, wo_ref, bo_ref,
                    ln1g_ref, ln1b_ref, w1_ref, b1_ref,
                    w2_ref, b2_ref, ln2g_ref, ln2b_ref,
                    cls_ref, *, B, S):
    # ---- embedding LayerNorm seeds the hidden state (live value, no scratch).
    h = _layernorm(emb_ref[...], eg_ref[...], eb_ref[...])            # (B*S, H) f32

    # ---- hoist the additive mask broadcast once (constant across layers/heads;
    #      JAX does not CSE broadcast_in_dim).
    mask_b = jnp.broadcast_to(mask_ref[...], (B, S, S))                # (B, S, S) f32

    # ---- static layer unroll: all (L, ...) weight stacks are VMEM-resident.
    for l in range(N_LAYERS):
        # fused QKV projection (1/sqrt(dh) pre-folded into q columns).
        qkv = jnp.dot(h.astype(MM_DTYPE), wqkv_ref[l],
                      preferred_element_type=jnp.float32) + bqkv_ref[l]   # (B*S, 3H)
        qkv_b = qkv.reshape(B, S, 3 * HIDDEN).astype(MM_DTYPE)           # bf16 once

        # TODO(synk): head loop kept as a static 2-way unroll; a single
        # 'bqhd,bkhd->bhqk' einsum (multi-batch-dim dot_general) is avoided
        # for safe Mosaic lowering at these shapes.
        ctx_heads = []
        for hd in range(N_HEADS):
            lo = hd * HEAD_DIM
            q = qkv_b[:, :, lo:lo + HEAD_DIM]                             # (B,S,dh) bf16
            k = qkv_b[:, :, HIDDEN + lo:HIDDEN + lo + HEAD_DIM]
            v = qkv_b[:, :, 2 * HIDDEN + lo:2 * HIDDEN + lo + HEAD_DIM]
            s = jnp.einsum('bqd,bkd->bqk', q, k,
                           preferred_element_type=jnp.float32) + mask_b   # (B,S,S) f32
            s = s - jnp.max(s, axis=-1, keepdims=True)
            p = jnp.exp(s)
            p = p * pl.reciprocal(jnp.sum(p, axis=-1, keepdims=True), approx=True)
            ctx_heads.append(jnp.einsum('bqk,bkd->bqd', p.astype(MM_DTYPE), v,
                                        preferred_element_type=jnp.float32))
        ctx = jnp.concatenate(ctx_heads, axis=-1).reshape(B * S, HIDDEN)

        # output projection; residual add folded into the LayerNorm body.
        attn = jnp.dot(ctx.astype(MM_DTYPE), wo_ref[l],
                       preferred_element_type=jnp.float32) + bo_ref[l]
        h1 = _layernorm(h + attn, ln1g_ref[l], ln1b_ref[l])

        # FFN; residual add folded into the LayerNorm body.
        ff = jnp.dot(h1.astype(MM_DTYPE), w1_ref[l],
                     preferred_element_type=jnp.float32) + b1_ref[l]
        ff = _gelu_exact(ff)
        ff = jnp.dot(ff.astype(MM_DTYPE), w2_ref[l],
                     preferred_element_type=jnp.float32) + b2_ref[l]
        h = _layernorm(h1 + ff, ln2g_ref[l], ln2b_ref[l])

    # ---- CLS pooling: only rows 0, S, 2S, ... leave the kernel.
    cls_ref[...] = jnp.concatenate([h[b * S:b * S + 1, :] for b in range(B)], axis=0)


# --------------------------- synthetic mini-BERT ---------------------------

def init_params(key):
    # TODO(synk): AutoModel.from_pretrained cannot load a checkpoint here;
    # deterministic synthetic weights stand in for the HF BERT parameters.
    def nrm(k, shape, s=0.02):
        return s * jax.random.normal(k, shape, dtype=jnp.float32)

    keys = iter(jax.random.split(key, 3 + N_LAYERS * 6))
    params = {
        "word_emb": nrm(next(keys), (VOCAB, HIDDEN)),
        "pos_emb": nrm(next(keys), (MAX_POS, HIDDEN)),
        "type_emb": nrm(next(keys), (2, HIDDEN)),
        "emb_ln_g": jnp.ones((1, HIDDEN), jnp.float32),
        "emb_ln_b": jnp.zeros((1, HIDDEN), jnp.float32),
    }

    scale = 1.0 / math.sqrt(HEAD_DIM)   # = 0.25: exact in bf16, pre-folded into q
    wqkv, bqkv, wo, bo = [], [], [], []
    ln1g, ln1b, w1, b1, w2, b2, ln2g, ln2b = ([] for _ in range(8))
    for _ in range(N_LAYERS):
        wq = nrm(next(keys), (HIDDEN, HIDDEN)) * scale
        wk = nrm(next(keys), (HIDDEN, HIDDEN))
        wv = nrm(next(keys), (HIDDEN, HIDDEN))
        wqkv.append(jnp.concatenate([wq, wk, wv], axis=1))      # (H, 3H)
        bqkv.append(jnp.zeros((1, 3 * HIDDEN), jnp.float32))
        wo.append(nrm(next(keys), (HIDDEN, HIDDEN)))
        bo.append(jnp.zeros((1, HIDDEN), jnp.float32))
        ln1g.append(jnp.ones((1, HIDDEN), jnp.float32))
        ln1b.append(jnp.zeros((1, HIDDEN), jnp.float32))
        w1.append(nrm(next(keys), (HIDDEN, FFN)))
        b1.append(jnp.zeros((1, FFN), jnp.float32))
        w2.append(nrm(next(keys), (FFN, HIDDEN)))
        b2.append(jnp.zeros((1, HIDDEN), jnp.float32))
        ln2g.append(jnp.ones((1, HIDDEN), jnp.float32))
        ln2b.append(jnp.zeros((1, HIDDEN), jnp.float32))

    params["wqkv"] = jnp.stack(wqkv).astype(MM_DTYPE)    # (L, H, 3H) bf16
    params["bqkv"] = jnp.stack(bqkv)                     # (L, 1, 3H) f32
    params["wo"] = jnp.stack(wo).astype(MM_DTYPE)        # (L, H, H)
    params["bo"] = jnp.stack(bo)
    params["ln1_g"] = jnp.stack(ln1g)
    params["ln1_b"] = jnp.stack(ln1b)
    params["w1"] = jnp.stack(w1).astype(MM_DTYPE)        # (L, H, FFN)
    params["b1"] = jnp.stack(b1)
    params["w2"] = jnp.stack(w2).astype(MM_DTYPE)        # (L, FFN, H)
    params["b2"] = jnp.stack(b2)
    params["ln2_g"] = jnp.stack(ln2g)
    params["ln2_b"] = jnp.stack(ln2b)
    return params


# ------------------------------- wrapper -----------------------------------

def _full_spec(shape):
    """Whole-array VMEM block (block_shape == array shape), single grid step."""
    nd = len(shape)
    return pl.BlockSpec(shape, lambda i, _nd=nd: (0,) * _nd)


def text_encoder_forward(params, input_ids, attention_mask):
    """Equivalent of TextEncoder.forward: BERT(...).last_hidden_state[:, 0, :]."""
    B, S = input_ids.shape
    H = HIDDEN

    # TODO(synk): embedding-table gather stays as plain-JAX glue (data-dependent
    # row gather); its LayerNorm runs inside the kernel.
    emb = (params["word_emb"][input_ids]
           + params["pos_emb"][:S][None, :, :]
           + params["type_emb"][0][None, None, :])
    emb2d = emb.reshape(B * S, H)

    # Additive attention-mask bias: 0 where attended, -1e9 where masked.
    mask_bias = ((1.0 - attention_mask.astype(jnp.float32)) * -1e9).reshape(B, 1, S)

    operands = (emb2d, params["emb_ln_g"], params["emb_ln_b"], mask_bias,
                params["wqkv"], params["bqkv"], params["wo"], params["bo"],
                params["ln1_g"], params["ln1_b"], params["w1"], params["b1"],
                params["w2"], params["b2"], params["ln2_g"], params["ln2_b"])

    cls = pl.pallas_call(
        partial(_encoder_kernel, B=B, S=S),
        out_shape=jax.ShapeDtypeStruct((B, H), jnp.float32),   # CLS rows only
        grid=(1,),                                              # single fused step
        in_specs=[_full_spec(x.shape) for x in operands],
        out_specs=pl.BlockSpec((B, H), lambda i: (0, 0)),
        compiler_params=pltpu.CompilerParams(
            dimension_semantics=("arbitrary",)),
    )(*operands)
    return cls


# ---------------------------------- main -----------------------------------

if __name__ == "__main__":
    key = jax.random.PRNGKey(0)
    kp, kids = jax.random.split(key)

    params = init_params(kp)

    B, S = 2, 8
    input_ids = jax.random.randint(kids, (B, S), 0, VOCAB, dtype=jnp.int32)
    # second example has 2 padding positions at the end
    attention_mask = jnp.array(
        [[1, 1, 1, 1, 1, 1, 1, 1],
         [1, 1, 1, 1, 1, 1, 0, 0]], dtype=jnp.int32)

    out = jax.jit(text_encoder_forward)(params, input_ids, attention_mask)
    out = jax.block_until_ready(out)
    assert out.shape == (B, HIDDEN)
    assert bool(jnp.all(jnp.isfinite(out)))
    print("KERNEL_OK")
</pallas_src>

<mosaic_0001>
module attributes {stable_mosaic.version = 11 : i64} {
  func.func @_encoder_kernel(%arg0: i32, %arg1: memref<16x32xf32, #tpu.memory_space<vmem>>, %arg2: memref<1x32xf32, #tpu.memory_space<vmem>>, %arg3: memref<1x32xf32, #tpu.memory_space<vmem>>, %arg4: memref<2x1x8xf32, #tpu.memory_space<vmem>>, %arg5: memref<2x32x96xbf16, #tpu.memory_space<vmem>>, %arg6: memref<2x1x96xf32, #tpu.memory_space<vmem>>, %arg7: memref<2x32x32xbf16, #tpu.memory_space<vmem>>, %arg8: memref<2x1x32xf32, #tpu.memory_space<vmem>>, %arg9: memref<2x1x32xf32, #tpu.memory_space<vmem>>, %arg10: memref<2x1x32xf32, #tpu.memory_space<vmem>>, %arg11: memref<2x32x64xbf16, #tpu.memory_space<vmem>>, %arg12: memref<2x1x64xf32, #tpu.memory_space<vmem>>, %arg13: memref<2x64x32xbf16, #tpu.memory_space<vmem>>, %arg14: memref<2x1x32xf32, #tpu.memory_space<vmem>>, %arg15: memref<2x1x32xf32, #tpu.memory_space<vmem>>, %arg16: memref<2x1x32xf32, #tpu.memory_space<vmem>>, %arg17: memref<2x32xf32, #tpu.memory_space<vmem>>) attributes {dimension_semantics = [#tpu.dimension_semantics<arbitrary>], iteration_bounds = array<i64: 1>, scalar_prefetch = 0 : i64, scratch_operands = 0 : i64, tpu.core_type = #tpu.core_type<tc>, window_params = [{pipeline_mode = #tpu.pipeline_mode<synchronous>, transform_indices = @transform_0, window_bounds = array<i64: 16, 32>}, {pipeline_mode = #tpu.pipeline_mode<synchronous>, transform_indices = @transform_1, window_bounds = array<i64: 1, 32>}, {pipeline_mode = #tpu.pipeline_mode<synchronous>, transform_indices = @transform_2, window_bounds = array<i64: 1, 32>}, {pipeline_mode = #tpu.pipeline_mode<synchronous>, transform_indices = @transform_3, window_bounds = array<i64: 2, 1, 8>}, {pipeline_mode = #tpu.pipeline_mode<synchronous>, transform_indices = @transform_4, window_bounds = array<i64: 2, 32, 96>}, {pipeline_mode = #tpu.pipeline_mode<synchronous>, transform_indices = @transform_5, window_bounds = array<i64: 2, 1, 96>}, {pipeline_mode = #tpu.pipeline_mode<synchronous>, transform_indices = @transform_6, window_bounds = array<i64: 2, 32, 32>}, {pipeline_mode = #tpu.pipeline_mode<synchronous>, transform_indices = @transform_7, window_bounds = array<i64: 2, 1, 32>}, {pipeline_mode = #tpu.pipeline_mode<synchronous>, transform_indices = @transform_8, window_bounds = array<i64: 2, 1, 32>}, {pipeline_mode = #tpu.pipeline_mode<synchronous>, transform_indices = @transform_9, window_bounds = array<i64: 2, 1, 32>}, {pipeline_mode = #tpu.pipeline_mode<synchronous>, transform_indices = @transform_10, window_bounds = array<i64: 2, 32, 64>}, {pipeline_mode = #tpu.pipeline_mode<synchronous>, transform_indices = @transform_11, window_bounds = array<i64: 2, 1, 64>}, {pipeline_mode = #tpu.pipeline_mode<synchronous>, transform_indices = @transform_12, window_bounds = array<i64: 2, 64, 32>}, {pipeline_mode = #tpu.pipeline_mode<synchronous>, transform_indices = @transform_13, window_bounds = array<i64: 2, 1, 32>}, {pipeline_mode = #tpu.pipeline_mode<synchronous>, transform_indices = @transform_14, window_bounds = array<i64: 2, 1, 32>}, {pipeline_mode = #tpu.pipeline_mode<synchronous>, transform_indices = @transform_15, window_bounds = array<i64: 2, 1, 32>}, {pipeline_mode = #tpu.pipeline_mode<synchronous>, transform_indices = @transform_16, window_bounds = array<i64: 2, 32>}]} {
    %c0 = arith.constant 0 : index
    %c0_0 = arith.constant 0 : index
    %0 = vector.load %arg1[%c0, %c0_0] : memref<16x32xf32, #tpu.memory_space<vmem>>, vector<16x32xf32>
    %c0_1 = arith.constant 0 : index
    %c0_2 = arith.constant 0 : index
    %1 = vector.load %arg2[%c0_1, %c0_2] : memref<1x32xf32, #tpu.memory_space<vmem>>, vector<1x32xf32>
    %c0_3 = arith.constant 0 : index
    %c0_4 = arith.constant 0 : index
    %2 = vector.load %arg3[%c0_3, %c0_4] : memref<1x32xf32, #tpu.memory_space<vmem>>, vector<1x32xf32>
    %cst = arith.constant dense<0.000000e+00> : vector<16xf32>
    %3 = vector.multi_reduction <add>, %0, %cst [1] : vector<16x32xf32> to vector<16xf32>
    %4 = vector.shape_cast %3 : vector<16xf32> to vector<16x1xf32>
    %cst_5 = arith.constant 3.200000e+01 : f32
    %5 = vector.broadcast %cst_5 : f32 to vector<16x1xf32>
    %6 = arith.divf %4, %5 : vector<16x1xf32>
    %7 = vector.broadcast %6 : vector<16x1xf32> to vector<16x32xf32>
    %8 = arith.subf %0, %7 : vector<16x32xf32>
    %9 = arith.mulf %8, %8 : vector<16x32xf32>
    %cst_6 = arith.constant dense<0.000000e+00> : vector<16xf32>
    %10 = vector.multi_reduction <add>, %9, %cst_6 [1] : vector<16x32xf32> to vector<16xf32>
    %11 = vector.shape_cast %10 : vector<16xf32> to vector<16x1xf32>
    %cst_7 = arith.constant 3.200000e+01 : f32
    %12 = vector.broadcast %cst_7 : f32 to vector<16x1xf32>
    %13 = arith.divf %11, %12 : vector<16x1xf32>
    %cst_8 = arith.constant 9.99999996E-13 : f32
    %14 = vector.broadcast %cst_8 : f32 to vector<16x1xf32>
    %15 = arith.addf %13, %14 : vector<16x1xf32>
    %16 = math.rsqrt %15 : vector<16x1xf32>
    %17 = vector.broadcast %16 : vector<16x1xf32> to vector<16x32xf32>
    %18 = arith.mulf %8, %17 : vector<16x32xf32>
    %19 = vector.broadcast %1 : vector<1x32xf32> to vector<16x32xf32>
    %20 = arith.mulf %18, %19 : vector<16x32xf32>
    %21 = vector.broadcast %2 : vector<1x32xf32> to vector<16x32xf32>
    %22 = arith.addf %20, %21 : vector<16x32xf32>
    %c0_9 = arith.constant 0 : index
    %c0_10 = arith.constant 0 : index
    %c0_11 = arith.constant 0 : index
    %23 = vector.load %arg4[%c0_9, %c0_10, %c0_11] : memref<2x1x8xf32, #tpu.memory_space<vmem>>, vector<2x1x8xf32>
    %24 = vector.shape_cast %23 : vector<2x1x8xf32> to vector<2x1x8xf32>
    %25 = vector.broadcast %24 : vector<2x1x8xf32> to vector<2x8x8xf32>
    %26 = arith.truncf %22 : vector<16x32xf32> to vector<16x32xbf16>
    %c0_12 = arith.constant 0 : index
    %c0_13 = arith.constant 0 : index
    %c0_14 = arith.constant 0 : index
    %27 = vector.load %arg5[%c0_12, %c0_13, %c0_14] : memref<2x32x96xbf16, #tpu.memory_space<vmem>>, vector<1x32x96xbf16>
    %28 = vector.shape_cast %27 : vector<1x32x96xbf16> to vector<32x96xbf16>
    %cst_15 = arith.constant dense<0.000000e+00> : vector<16x96xf32>
    %29 = tpu.matmul %26, %28, %cst_15 {dimension_numbers = #tpu.dot_dimension_numbers<[1], [0], [0], [1], [0, 0, 1, 1], [], []>} : vector<16x32xbf16>, vector<32x96xbf16>, vector<16x96xf32> -> vector<16x96xf32>
    %c0_16 = arith.constant 0 : index
    %c0_17 = arith.constant 0 : index
    %c0_18 = arith.constant 0 : index
    %30 = vector.load %arg6[%c0_16, %c0_17, %c0_18] : memref<2x1x96xf32, #tpu.memory_space<vmem>>, vector<1x1x96xf32>
    %31 = vector.shape_cast %30 : vector<1x1x96xf32> to vector<1x96xf32>
    %32 = vector.broadcast %31 : vector<1x96xf32> to vector<16x96xf32>
    %33 = arith.addf %29, %32 : vector<16x96xf32>
    %34 = vector.shape_cast %33 : vector<16x96xf32> to vector<2x8x96xf32>
    %35 = arith.truncf %34 : vector<2x8x96xf32> to vector<2x8x96xbf16>
    %36 = vector.extract_strided_slice %35 {offsets = [0, 0, 0], sizes = [2, 8, 16], strides = [1, 1, 1]} : vector<2x8x96xbf16> to vector<2x8x16xbf16>
    %37 = vector.extract_strided_slice %35 {offsets = [0, 0, 32], sizes = [2, 8, 16], strides = [1, 1, 1]} : vector<2x8x96xbf16> to vector<2x8x16xbf16>
    %38 = vector.extract_strided_slice %35 {offsets = [0, 0, 64], sizes = [2, 8, 16], strides = [1, 1, 1]} : vector<2x8x96xbf16> to vector<2x8x16xbf16>
    "tpu.trace_start"() <{level = 10 : i32, message = "bqd,bkd->bqk"}> : () -> ()
    %cst_19 = arith.constant dense<0.000000e+00> : vector<2x8x8xf32>
    %39 = tpu.matmul %36, %37, %cst_19 {dimension_numbers = #tpu.dot_dimension_numbers<[2], [2], [1], [1], [0, 0, 0, 1, 1, 1], [0], [0]>} : vector<2x8x16xbf16>, vector<2x8x16xbf16>, vector<2x8x8xf32> -> vector<2x8x8xf32>
    "tpu.trace_stop"() : () -> ()
    %40 = arith.addf %39, %25 : vector<2x8x8xf32>
    %cst_20 = arith.constant dense<0xFF800000> : vector<2x8xf32>
    %41 = vector.multi_reduction <maximumf>, %40, %cst_20 [2] : vector<2x8x8xf32> to vector<2x8xf32>
    %42 = vector.shape_cast %41 : vector<2x8xf32> to vector<2x8x1xf32>
    %43 = vector.broadcast %42 : vector<2x8x1xf32> to vector<2x8x8xf32>
    %44 = arith.subf %40, %43 : vector<2x8x8xf32>
    %45 = math.exp %44 : vector<2x8x8xf32>
    %cst_21 = arith.constant dense<0.000000e+00> : vector<2x8xf32>
    %46 = vector.multi_reduction <add>, %45, %cst_21 [2] : vector<2x8x8xf32> to vector<2x8xf32>
    %47 = vector.shape_cast %46 : vector<2x8xf32> to vector<2x8x1xf32>
    %48 = tpu.reciprocal %47 {approx = true} : vector<2x8x1xf32> -> vector<2x8x1xf32>
    %49 = vector.broadcast %48 : vector<2x8x1xf32> to vector<2x8x8xf32>
    %50 = arith.mulf %45, %49 : vector<2x8x8xf32>
    %51 = arith.truncf %50 : vector<2x8x8xf32> to vector<2x8x8xbf16>
    "tpu.trace_start"() <{level = 10 : i32, message = "bqk,bkd->bqd"}> : () -> ()
    %cst_22 = arith.constant dense<0.000000e+00> : vector<2x8x16xf32>
    %52 = tpu.matmul %51, %38, %cst_22 {dimension_numbers = #tpu.dot_dimension_numbers<[2], [1], [1], [2], [0, 0, 0, 1, 1, 2], [0], [0]>} : vector<2x8x8xbf16>, vector<2x8x16xbf16>, vector<2x8x16xf32> -> vector<2x8x16xf32>
    "tpu.trace_stop"() : () -> ()
    %53 = vector.extract_strided_slice %35 {offsets = [0, 0, 16], sizes = [2, 8, 16], strides = [1, 1, 1]} : vector<2x8x96xbf16> to vector<2x8x16xbf16>
    %54 = vector.extract_strided_slice %35 {offsets = [0, 0, 48], sizes = [2, 8, 16], strides = [1, 1, 1]} : vector<2x8x96xbf16> to vector<2x8x16xbf16>
    %55 = vector.extract_strided_slice %35 {offsets = [0, 0, 80], sizes = [2, 8, 16], strides = [1, 1, 1]} : vector<2x8x96xbf16> to vector<2x8x16xbf16>
    "tpu.trace_start"() <{level = 10 : i32, message = "bqd,bkd->bqk"}> : () -> ()
    %cst_23 = arith.constant dense<0.000000e+00> : vector<2x8x8xf32>
    %56 = tpu.matmul %53, %54, %cst_23 {dimension_numbers = #tpu.dot_dimension_numbers<[2], [2], [1], [1], [0, 0, 0, 1, 1, 1], [0], [0]>} : vector<2x8x16xbf16>, vector<2x8x16xbf16>, vector<2x8x8xf32> -> vector<2x8x8xf32>
    "tpu.trace_stop"() : () -> ()
    %57 = arith.addf %56, %25 : vector<2x8x8xf32>
    %cst_24 = arith.constant dense<0xFF800000> : vector<2x8xf32>
    %58 = vector.multi_reduction <maximumf>, %57, %cst_24 [2] : vector<2x8x8xf32> to vector<2x8xf32>
    %59 = vector.shape_cast %58 : vector<2x8xf32> to vector<2x8x1xf32>
    %60 = vector.broadcast %59 : vector<2x8x1xf32> to vector<2x8x8xf32>
    %61 = arith.subf %57, %60 : vector<2x8x8xf32>
    %62 = math.exp %61 : vector<2x8x8xf32>
    %cst_25 = arith.constant dense<0.000000e+00> : vector<2x8xf32>
    %63 = vector.multi_reduction <add>, %62, %cst_25 [2] : vector<2x8x8xf32> to vector<2x8xf32>
    %64 = vector.shape_cast %63 : vector<2x8xf32> to vector<2x8x1xf32>
    %65 = tpu.reciprocal %64 {approx = true} : vector<2x8x1xf32> -> vector<2x8x1xf32>
    %66 = vector.broadcast %65 : vector<2x8x1xf32> to vector<2x8x8xf32>
    %67 = arith.mulf %62, %66 : vector<2x8x8xf32>
    %68 = arith.truncf %67 : vector<2x8x8xf32> to vector<2x8x8xbf16>
    "tpu.trace_start"() <{level = 10 : i32, message = "bqk,bkd->bqd"}> : () -> ()
    %cst_26 = arith.constant dense<0.000000e+00> : vector<2x8x16xf32>
    %69 = tpu.matmul %68, %55, %cst_26 {dimension_numbers = #tpu.dot_dimension_numbers<[2], [1], [1], [2], [0, 0, 0, 1, 1, 2], [0], [0]>} : vector<2x8x8xbf16>, vector<2x8x16xbf16>, vector<2x8x16xf32> -> vector<2x8x16xf32>
    "tpu.trace_stop"() : () -> ()
    %70 = tpu.concatenate %52, %69 in 2 : vector<2x8x16xf32>, vector<2x8x16xf32> -> vector<2x8x32xf32>
    %71 = vector.shape_cast %70 : vector<2x8x32xf32> to vector<16x32xf32>
    %72 = arith.truncf %71 : vector<16x32xf32> to vector<16x32xbf16>
    %c0_27 = arith.constant 0 : index
    %c0_28 = arith.constant 0 : index
    %c0_29 = arith.constant 0 : index
    %73 = vector.load %arg7[%c0_27, %c0_28, %c0_29] : memref<2x32x32xbf16, #tpu.memory_space<vmem>>, vector<1x32x32xbf16>
    %74 = vector.shape_cast %73 : vector<1x32x32xbf16> to vector<32x32xbf16>
    %cst_30 = arith.constant dense<0.000000e+00> : vector<16x32xf32>
    %75 = tpu.matmul %72, %74, %cst_30 {dimension_numbers = #tpu.dot_dimension_numbers<[1], [0], [0], [1], [0, 0, 1, 1], [], []>} : vector<16x32xbf16>, vector<32x32xbf16>, vector<16x32xf32> -> vector<16x32xf32>
    %c0_31 = arith.constant 0 : index
    %c0_32 = arith.constant 0 : index
    %c0_33 = arith.constant 0 : index
    %76 = vector.load %arg8[%c0_31, %c0_32, %c0_33] : memref<2x1x32xf32, #tpu.memory_space<vmem>>, vector<1x1x32xf32>
    %77 = vector.shape_cast %76 : vector<1x1x32xf32> to vector<1x32xf32>
    %78 = vector.broadcast %77 : vector<1x32xf32> to vector<16x32xf32>
    %79 = arith.addf %75, %78 : vector<16x32xf32>
    %80 = arith.addf %22, %79 : vector<16x32xf32>
    %c0_34 = arith.constant 0 : index
    %c0_35 = arith.constant 0 : index
    %c0_36 = arith.constant 0 : index
    %81 = vector.load %arg9[%c0_34, %c0_35, %c0_36] : memref<2x1x32xf32, #tpu.memory_space<vmem>>, vector<1x1x32xf32>
    %82 = vector.shape_cast %81 : vector<1x1x32xf32> to vector<1x32xf32>
    %c0_37 = arith.constant 0 : index
    %c0_38 = arith.constant 0 : index
    %c0_39 = arith.constant 0 : index
    %83 = vector.load %arg10[%c0_37, %c0_38, %c0_39] : memref<2x1x32xf32, #tpu.memory_space<vmem>>, vector<1x1x32xf32>
    %84 = vector.shape_cast %83 : vector<1x1x32xf32> to vector<1x32xf32>
    %cst_40 = arith.constant dense<0.000000e+00> : vector<16xf32>
    %85 = vector.multi_reduction <add>, %80, %cst_40 [1] : vector<16x32xf32> to vector<16xf32>
    %86 = vector.shape_cast %85 : vector<16xf32> to vector<16x1xf32>
    %cst_41 = arith.constant 3.200000e+01 : f32
    %87 = vector.broadcast %cst_41 : f32 to vector<16x1xf32>
    %88 = arith.divf %86, %87 : vector<16x1xf32>
    %89 = vector.broadcast %88 : vector<16x1xf32> to vector<16x32xf32>
    %90 = arith.subf %80, %89 : vector<16x32xf32>
    %91 = arith.mulf %90, %90 : vector<16x32xf32>
    %cst_42 = arith.constant dense<0.000000e+00> : vector<16xf32>
    %92 = vector.multi_reduction <add>, %91, %cst_42 [1] : vector<16x32xf32> to vector<16xf32>
    %93 = vector.shape_cast %92 : vector<16xf32> to vector<16x1xf32>
    %cst_43 = arith.constant 3.200000e+01 : f32
    %94 = vector.broadcast %cst_43 : f32 to vector<16x1xf32>
    %95 = arith.divf %93, %94 : vector<16x1xf32>
    %cst_44 = arith.constant 9.99999996E-13 : f32
    %96 = vector.broadcast %cst_44 : f32 to vector<16x1xf32>
    %97 = arith.addf %95, %96 : vector<16x1xf32>
    %98 = math.rsqrt %97 : vector<16x1xf32>
    %99 = vector.broadcast %98 : vector<16x1xf32> to vector<16x32xf32>
    %100 = arith.mulf %90, %99 : vector<16x32xf32>
    %101 = vector.broadcast %82 : vector<1x32xf32> to vector<16x32xf32>
    %102 = arith.mulf %100, %101 : vector<16x32xf32>
    %103 = vector.broadcast %84 : vector<1x32xf32> to vector<16x32xf32>
    %104 = arith.addf %102, %103 : vector<16x32xf32>
    %105 = arith.truncf %104 : vector<16x32xf32> to vector<16x32xbf16>
    %c0_45 = arith.constant 0 : index
    %c0_46 = arith.constant 0 : index
    %c0_47 = arith.constant 0 : index
    %106 = vector.load %arg11[%c0_45, %c0_46, %c0_47] : memref<2x32x64xbf16, #tpu.memory_space<vmem>>, vector<1x32x64xbf16>
    %107 = vector.shape_cast %106 : vector<1x32x64xbf16> to vector<32x64xbf16>
    %cst_48 = arith.constant dense<0.000000e+00> : vector<16x64xf32>
    %108 = tpu.matmul %105, %107, %cst_48 {dimension_numbers = #tpu.dot_dimension_numbers<[1], [0], [0], [1], [0, 0, 1, 1], [], []>} : vector<16x32xbf16>, vector<32x64xbf16>, vector<16x64xf32> -> vector<16x64xf32>
    %c0_49 = arith.constant 0 : index
    %c0_50 = arith.constant 0 : index
    %c0_51 = arith.constant 0 : index
    %109 = vector.load %arg12[%c0_49, %c0_50, %c0_51] : memref<2x1x64xf32, #tpu.memory_space<vmem>>, vector<1x1x64xf32>
    %110 = vector.shape_cast %109 : vector<1x1x64xf32> to vector<1x64xf32>
    %111 = vector.broadcast %110 : vector<1x64xf32> to vector<16x64xf32>
    %112 = arith.addf %108, %111 : vector<16x64xf32>
    %cst_52 = arith.constant 5.000000e-01 : f32
    %113 = vector.broadcast %cst_52 : f32 to vector<16x64xf32>
    %114 = arith.mulf %113, %112 : vector<16x64xf32>
    %cst_53 = arith.constant 0.707106769 : f32
    %115 = vector.broadcast %cst_53 : f32 to vector<16x64xf32>
    %116 = arith.mulf %112, %115 : vector<16x64xf32>
    %117 = math.erf %116 : vector<16x64xf32>
    %cst_54 = arith.constant 1.000000e+00 : f32
    %118 = vector.broadcast %cst_54 : f32 to vector<16x64xf32>
    %119 = arith.addf %118, %117 : vector<16x64xf32>
    %120 = arith.mulf %114, %119 : vector<16x64xf32>
    %121 = arith.truncf %120 : vector<16x64xf32> to vector<16x64xbf16>
    %c0_55 = arith.constant 0 : index
    %c0_56 = arith.constant 0 : index
    %c0_57 = arith.constant 0 : index
    %122 = vector.load %arg13[%c0_55, %c0_56, %c0_57] : memref<2x64x32xbf16, #tpu.memory_space<vmem>>, vector<1x64x32xbf16>
    %123 = vector.shape_cast %122 : vector<1x64x32xbf16> to vector<64x32xbf16>
    %cst_58 = arith.constant dense<0.000000e+00> : vector<16x32xf32>
    %124 = tpu.matmul %121, %123, %cst_58 {dimension_numbers = #tpu.dot_dimension_numbers<[1], [0], [0], [1], [0, 0, 1, 1], [], []>} : vector<16x64xbf16>, vector<64x32xbf16>, vector<16x32xf32> -> vector<16x32xf32>
    %c0_59 = arith.constant 0 : index
    %c0_60 = arith.constant 0 : index
    %c0_61 = arith.constant 0 : index
    %125 = vector.load %arg14[%c0_59, %c0_60, %c0_61] : memref<2x1x32xf32, #tpu.memory_space<vmem>>, vector<1x1x32xf32>
    %126 = vector.shape_cast %125 : vector<1x1x32xf32> to vector<1x32xf32>
    %127 = vector.broadcast %126 : vector<1x32xf32> to vector<16x32xf32>
    %128 = arith.addf %124, %127 : vector<16x32xf32>
    %129 = arith.addf %104, %128 : vector<16x32xf32>
    %c0_62 = arith.constant 0 : index
    %c0_63 = arith.constant 0 : index
    %c0_64 = arith.constant 0 : index
    %130 = vector.load %arg15[%c0_62, %c0_63, %c0_64] : memref<2x1x32xf32, #tpu.memory_space<vmem>>, vector<1x1x32xf32>
    %131 = vector.shape_cast %130 : vector<1x1x32xf32> to vector<1x32xf32>
    %c0_65 = arith.constant 0 : index
    %c0_66 = arith.constant 0 : index
    %c0_67 = arith.constant 0 : index
    %132 = vector.load %arg16[%c0_65, %c0_66, %c0_67] : memref<2x1x32xf32, #tpu.memory_space<vmem>>, vector<1x1x32xf32>
    %133 = vector.shape_cast %132 : vector<1x1x32xf32> to vector<1x32xf32>
    %cst_68 = arith.constant dense<0.000000e+00> : vector<16xf32>
    %134 = vector.multi_reduction <add>, %129, %cst_68 [1] : vector<16x32xf32> to vector<16xf32>
    %135 = vector.shape_cast %134 : vector<16xf32> to vector<16x1xf32>
    %cst_69 = arith.constant 3.200000e+01 : f32
    %136 = vector.broadcast %cst_69 : f32 to vector<16x1xf32>
    %137 = arith.divf %135, %136 : vector<16x1xf32>
    %138 = vector.broadcast %137 : vector<16x1xf32> to vector<16x32xf32>
    %139 = arith.subf %129, %138 : vector<16x32xf32>
    %140 = arith.mulf %139, %139 : vector<16x32xf32>
    %cst_70 = arith.constant dense<0.000000e+00> : vector<16xf32>
    %141 = vector.multi_reduction <add>, %140, %cst_70 [1] : vector<16x32xf32> to vector<16xf32>
    %142 = vector.shape_cast %141 : vector<16xf32> to vector<16x1xf32>
    %cst_71 = arith.constant 3.200000e+01 : f32
    %143 = vector.broadcast %cst_71 : f32 to vector<16x1xf32>
    %144 = arith.divf %142, %143 : vector<16x1xf32>
    %cst_72 = arith.constant 9.99999996E-13 : f32
    %145 = vector.broadcast %cst_72 : f32 to vector<16x1xf32>
    %146 = arith.addf %144, %145 : vector<16x1xf32>
    %147 = math.rsqrt %146 : vector<16x1xf32>
    %148 = vector.broadcast %147 : vector<16x1xf32> to vector<16x32xf32>
    %149 = arith.mulf %139, %148 : vector<16x32xf32>
    %150 = vector.broadcast %131 : vector<1x32xf32> to vector<16x32xf32>
    %151 = arith.mulf %149, %150 : vector<16x32xf32>
    %152 = vector.broadcast %133 : vector<1x32xf32> to vector<16x32xf32>
    %153 = arith.addf %151, %152 : vector<16x32xf32>
    %154 = arith.truncf %153 : vector<16x32xf32> to vector<16x32xbf16>
    %c1 = arith.constant 1 : index
    %c0_73 = arith.constant 0 : index
    %c0_74 = arith.constant 0 : index
    %155 = vector.load %arg5[%c1, %c0_73, %c0_74] : memref<2x32x96xbf16, #tpu.memory_space<vmem>>, vector<1x32x96xbf16>
    %156 = vector.shape_cast %155 : vector<1x32x96xbf16> to vector<32x96xbf16>
    %cst_75 = arith.constant dense<0.000000e+00> : vector<16x96xf32>
    %157 = tpu.matmul %154, %156, %cst_75 {dimension_numbers = #tpu.dot_dimension_numbers<[1], [0], [0], [1], [0, 0, 1, 1], [], []>} : vector<16x32xbf16>, vector<32x96xbf16>, vector<16x96xf32> -> vector<16x96xf32>
    %c1_76 = arith.constant 1 : index
    %c0_77 = arith.constant 0 : index
    %c0_78 = arith.constant 0 : index
    %158 = vector.load %arg6[%c1_76, %c0_77, %c0_78] : memref<2x1x96xf32, #tpu.memory_space<vmem>>, vector<1x1x96xf32>
    %159 = vector.shape_cast %158 : vector<1x1x96xf32> to vector<1x96xf32>
    %160 = vector.broadcast %159 : vector<1x96xf32> to vector<16x96xf32>
    %161 = arith.addf %157, %160 : vector<16x96xf32>
    %162 = vector.shape_cast %161 : vector<16x96xf32> to vector<2x8x96xf32>
    %163 = arith.truncf %162 : vector<2x8x96xf32> to vector<2x8x96xbf16>
    %164 = vector.extract_strided_slice %163 {offsets = [0, 0, 0], sizes = [2, 8, 16], strides = [1, 1, 1]} : vector<2x8x96xbf16> to vector<2x8x16xbf16>
    %165 = vector.extract_strided_slice %163 {offsets = [0, 0, 32], sizes = [2, 8, 16], strides = [1, 1, 1]} : vector<2x8x96xbf16> to vector<2x8x16xbf16>
    %166 = vector.extract_strided_slice %163 {offsets = [0, 0, 64], sizes = [2, 8, 16], strides = [1, 1, 1]} : vector<2x8x96xbf16> to vector<2x8x16xbf16>
    "tpu.trace_start"() <{level = 10 : i32, message = "bqd,bkd->bqk"}> : () -> ()
    %cst_79 = arith.constant dense<0.000000e+00> : vector<2x8x8xf32>
    %167 = tpu.matmul %164, %165, %cst_79 {dimension_numbers = #tpu.dot_dimension_numbers<[2], [2], [1], [1], [0, 0, 0, 1, 1, 1], [0], [0]>} : vector<2x8x16xbf16>, vector<2x8x16xbf16>, vector<2x8x8xf32> -> vector<2x8x8xf32>
    "tpu.trace_stop"() : () -> ()
    %168 = arith.addf %167, %25 : vector<2x8x8xf32>
    %cst_80 = arith.constant dense<0xFF800000> : vector<2x8xf32>
    %169 = vector.multi_reduction <maximumf>, %168, %cst_80 [2] : vector<2x8x8xf32> to vector<2x8xf32>
    %170 = vector.shape_cast %169 : vector<2x8xf32> to vector<2x8x1xf32>
    %171 = vector.broadcast %170 : vector<2x8x1xf32> to vector<2x8x8xf32>
    %172 = arith.subf %168, %171 : vector<2x8x8xf32>
    %173 = math.exp %172 : vector<2x8x8xf32>
    %cst_81 = arith.constant dense<0.000000e+00> : vector<2x8xf32>
    %174 = vector.multi_reduction <add>, %173, %cst_81 [2] : vector<2x8x8xf32> to vector<2x8xf32>
    %175 = vector.shape_cast %174 : vector<2x8xf32> to vector<2x8x1xf32>
    %176 = tpu.reciprocal %175 {approx = true} : vector<2x8x1xf32> -> vector<2x8x1xf32>
    %177 = vector.broadcast %176 : vector<2x8x1xf32> to vector<2x8x8xf32>
    %178 = arith.mulf %173, %177 : vector<2x8x8xf32>
    %179 = arith.truncf %178 : vector<2x8x8xf32> to vector<2x8x8xbf16>
    "tpu.trace_start"() <{level = 10 : i32, message = "bqk,bkd->bqd"}> : () -> ()
    %cst_82 = arith.constant dense<0.000000e+00> : vector<2x8x16xf32>
    %180 = tpu.matmul %179, %166, %cst_82 {dimension_numbers = #tpu.dot_dimension_numbers<[2], [1], [1], [2], [0, 0, 0, 1, 1, 2], [0], [0]>} : vector<2x8x8xbf16>, vector<2x8x16xbf16>, vector<2x8x16xf32> -> vector<2x8x16xf32>
    "tpu.trace_stop"() : () -> ()
    %181 = vector.extract_strided_slice %163 {offsets = [0, 0, 16], sizes = [2, 8, 16], strides = [1, 1, 1]} : vector<2x8x96xbf16> to vector<2x8x16xbf16>
    %182 = vector.extract_strided_slice %163 {offsets = [0, 0, 48], sizes = [2, 8, 16], strides = [1, 1, 1]} : vector<2x8x96xbf16> to vector<2x8x16xbf16>
    %183 = vector.extract_strided_slice %163 {offsets = [0, 0, 80], sizes = [2, 8, 16], strides = [1, 1, 1]} : vector<2x8x96xbf16> to vector<2x8x16xbf16>
    "tpu.trace_start"() <{level = 10 : i32, message = "bqd,bkd->bqk"}> : () -> ()
    %cst_83 = arith.constant dense<0.000000e+00> : vector<2x8x8xf32>
    %184 = tpu.matmul %181, %182, %cst_83 {dimension_numbers = #tpu.dot_dimension_numbers<[2], [2], [1], [1], [0, 0, 0, 1, 1, 1], [0], [0]>} : vector<2x8x16xbf16>, vector<2x8x16xbf16>, vector<2x8x8xf32> -> vector<2x8x8xf32>
    "tpu.trace_stop"() : () -> ()
    %185 = arith.addf %184, %25 : vector<2x8x8xf32>
    %cst_84 = arith.constant dense<0xFF800000> : vector<2x8xf32>
    %186 = vector.multi_reduction <maximumf>, %185, %cst_84 [2] : vector<2x8x8xf32> to vector<2x8xf32>
    %187 = vector.shape_cast %186 : vector<2x8xf32> to vector<2x8x1xf32>
    %188 = vector.broadcast %187 : vector<2x8x1xf32> to vector<2x8x8xf32>
    %189 = arith.subf %185, %188 : vector<2x8x8xf32>
    %190 = math.exp %189 : vector<2x8x8xf32>
    %cst_85 = arith.constant dense<0.000000e+00> : vector<2x8xf32>
    %191 = vector.multi_reduction <add>, %190, %cst_85 [2] : vector<2x8x8xf32> to vector<2x8xf32>
    %192 = vector.shape_cast %191 : vector<2x8xf32> to vector<2x8x1xf32>
    %193 = tpu.reciprocal %192 {approx = true} : vector<2x8x1xf32> -> vector<2x8x1xf32>
    %194 = vector.broadcast %193 : vector<2x8x1xf32> to vector<2x8x8xf32>
    %195 = arith.mulf %190, %194 : vector<2x8x8xf32>
    %196 = arith.truncf %195 : vector<2x8x8xf32> to vector<2x8x8xbf16>
    "tpu.trace_start"() <{level = 10 : i32, message = "bqk,bkd->bqd"}> : () -> ()
    %cst_86 = arith.constant dense<0.000000e+00> : vector<2x8x16xf32>
    %197 = tpu.matmul %196, %183, %cst_86 {dimension_numbers = #tpu.dot_dimension_numbers<[2], [1], [1], [2], [0, 0, 0, 1, 1, 2], [0], [0]>} : vector<2x8x8xbf16>, vector<2x8x16xbf16>, vector<2x8x16xf32> -> vector<2x8x16xf32>
    "tpu.trace_stop"() : () -> ()
    %198 = tpu.concatenate %180, %197 in 2 : vector<2x8x16xf32>, vector<2x8x16xf32> -> vector<2x8x32xf32>
    %199 = vector.shape_cast %198 : vector<2x8x32xf32> to vector<16x32xf32>
    %200 = arith.truncf %199 : vector<16x32xf32> to vector<16x32xbf16>
    %c1_87 = arith.constant 1 : index
    %c0_88 = arith.constant 0 : index
    %c0_89 = arith.constant 0 : index
    %201 = vector.load %arg7[%c1_87, %c0_88, %c0_89] : memref<2x32x32xbf16, #tpu.memory_space<vmem>>, vector<1x32x32xbf16>
    %202 = vector.shape_cast %201 : vector<1x32x32xbf16> to vector<32x32xbf16>
    %cst_90 = arith.constant dense<0.000000e+00> : vector<16x32xf32>
    %203 = tpu.matmul %200, %202, %cst_90 {dimension_numbers = #tpu.dot_dimension_numbers<[1], [0], [0], [1], [0, 0, 1, 1], [], []>} : vector<16x32xbf16>, vector<32x32xbf16>, vector<16x32xf32> -> vector<16x32xf32>
    %c1_91 = arith.constant 1 : index
    %c0_92 = arith.constant 0 : index
    %c0_93 = arith.constant 0 : index
    %204 = vector.load %arg8[%c1_91, %c0_92, %c0_93] : memref<2x1x32xf32, #tpu.memory_space<vmem>>, vector<1x1x32xf32>
    %205 = vector.shape_cast %204 : vector<1x1x32xf32> to vector<1x32xf32>
    %206 = vector.broadcast %205 : vector<1x32xf32> to vector<16x32xf32>
    %207 = arith.addf %203, %206 : vector<16x32xf32>
    %208 = arith.addf %153, %207 : vector<16x32xf32>
    %c1_94 = arith.constant 1 : index
    %c0_95 = arith.constant 0 : index
    %c0_96 = arith.constant 0 : index
    %209 = vector.load %arg9[%c1_94, %c0_95, %c0_96] : memref<2x1x32xf32, #tpu.memory_space<vmem>>, vector<1x1x32xf32>
    %210 = vector.shape_cast %209 : vector<1x1x32xf32> to vector<1x32xf32>
    %c1_97 = arith.constant 1 : index
    %c0_98 = arith.constant 0 : index
    %c0_99 = arith.constant 0 : index
    %211 = vector.load %arg10[%c1_97, %c0_98, %c0_99] : memref<2x1x32xf32, #tpu.memory_space<vmem>>, vector<1x1x32xf32>
    %212 = vector.shape_cast %211 : vector<1x1x32xf32> to vector<1x32xf32>
    %cst_100 = arith.constant dense<0.000000e+00> : vector<16xf32>
    %213 = vector.multi_reduction <add>, %208, %cst_100 [1] : vector<16x32xf32> to vector<16xf32>
    %214 = vector.shape_cast %213 : vector<16xf32> to vector<16x1xf32>
    %cst_101 = arith.constant 3.200000e+01 : f32
    %215 = vector.broadcast %cst_101 : f32 to vector<16x1xf32>
    %216 = arith.divf %214, %215 : vector<16x1xf32>
    %217 = vector.broadcast %216 : vector<16x1xf32> to vector<16x32xf32>
    %218 = arith.subf %208, %217 : vector<16x32xf32>
    %219 = arith.mulf %218, %218 : vector<16x32xf32>
    %cst_102 = arith.constant dense<0.000000e+00> : vector<16xf32>
    %220 = vector.multi_reduction <add>, %219, %cst_102 [1] : vector<16x32xf32> to vector<16xf32>
    %221 = vector.shape_cast %220 : vector<16xf32> to vector<16x1xf32>
    %cst_103 = arith.constant 3.200000e+01 : f32
    %222 = vector.broadcast %cst_103 : f32 to vector<16x1xf32>
    %223 = arith.divf %221, %222 : vector<16x1xf32>
    %cst_104 = arith.constant 9.99999996E-13 : f32
    %224 = vector.broadcast %cst_104 : f32 to vector<16x1xf32>
    %225 = arith.addf %223, %224 : vector<16x1xf32>
    %226 = math.rsqrt %225 : vector<16x1xf32>
    %227 = vector.broadcast %226 : vector<16x1xf32> to vector<16x32xf32>
    %228 = arith.mulf %218, %227 : vector<16x32xf32>
    %229 = vector.broadcast %210 : vector<1x32xf32> to vector<16x32xf32>
    %230 = arith.mulf %228, %229 : vector<16x32xf32>
    %231 = vector.broadcast %212 : vector<1x32xf32> to vector<16x32xf32>
    %232 = arith.addf %230, %231 : vector<16x32xf32>
    %233 = arith.truncf %232 : vector<16x32xf32> to vector<16x32xbf16>
    %c1_105 = arith.constant 1 : index
    %c0_106 = arith.constant 0 : index
    %c0_107 = arith.constant 0 : index
    %234 = vector.load %arg11[%c1_105, %c0_106, %c0_107] : memref<2x32x64xbf16, #tpu.memory_space<vmem>>, vector<1x32x64xbf16>
    %235 = vector.shape_cast %234 : vector<1x32x64xbf16> to vector<32x64xbf16>
    %cst_108 = arith.constant dense<0.000000e+00> : vector<16x64xf32>
    %236 = tpu.matmul %233, %235, %cst_108 {dimension_numbers = #tpu.dot_dimension_numbers<[1], [0], [0], [1], [0, 0, 1, 1], [], []>} : vector<16x32xbf16>, vector<32x64xbf16>, vector<16x64xf32> -> vector<16x64xf32>
    %c1_109 = arith.constant 1 : index
    %c0_110 = arith.constant 0 : index
    %c0_111 = arith.constant 0 : index
    %237 = vector.load %arg12[%c1_109, %c0_110, %c0_111] : memref<2x1x64xf32, #tpu.memory_space<vmem>>, vector<1x1x64xf32>
    %238 = vector.shape_cast %237 : vector<1x1x64xf32> to vector<1x64xf32>
    %239 = vector.broadcast %238 : vector<1x64xf32> to vector<16x64xf32>
    %240 = arith.addf %236, %239 : vector<16x64xf32>
    %cst_112 = arith.constant 5.000000e-01 : f32
    %241 = vector.broadcast %cst_112 : f32 to vector<16x64xf32>
    %242 = arith.mulf %241, %240 : vector<16x64xf32>
    %cst_113 = arith.constant 0.707106769 : f32
    %243 = vector.broadcast %cst_113 : f32 to vector<16x64xf32>
    %244 = arith.mulf %240, %243 : vector<16x64xf32>
    %245 = math.erf %244 : vector<16x64xf32>
    %cst_114 = arith.constant 1.000000e+00 : f32
    %246 = vector.broadcast %cst_114 : f32 to vector<16x64xf32>
    %247 = arith.addf %246, %245 : vector<16x64xf32>
    %248 = arith.mulf %242, %247 : vector<16x64xf32>
    %249 = arith.truncf %248 : vector<16x64xf32> to vector<16x64xbf16>
    %c1_115 = arith.constant 1 : index
    %c0_116 = arith.constant 0 : index
    %c0_117 = arith.constant 0 : index
    %250 = vector.load %arg13[%c1_115, %c0_116, %c0_117] : memref<2x64x32xbf16, #tpu.memory_space<vmem>>, vector<1x64x32xbf16>
    %251 = vector.shape_cast %250 : vector<1x64x32xbf16> to vector<64x32xbf16>
    %cst_118 = arith.constant dense<0.000000e+00> : vector<16x32xf32>
    %252 = tpu.matmul %249, %251, %cst_118 {dimension_numbers = #tpu.dot_dimension_numbers<[1], [0], [0], [1], [0, 0, 1, 1], [], []>} : vector<16x64xbf16>, vector<64x32xbf16>, vector<16x32xf32> -> vector<16x32xf32>
    %c1_119 = arith.constant 1 : index
    %c0_120 = arith.constant 0 : index
    %c0_121 = arith.constant 0 : index
    %253 = vector.load %arg14[%c1_119, %c0_120, %c0_121] : memref<2x1x32xf32, #tpu.memory_space<vmem>>, vector<1x1x32xf32>
    %254 = vector.shape_cast %253 : vector<1x1x32xf32> to vector<1x32xf32>
    %255 = vector.broadcast %254 : vector<1x32xf32> to vector<16x32xf32>
    %256 = arith.addf %252, %255 : vector<16x32xf32>
    %257 = arith.addf %232, %256 : vector<16x32xf32>
    %c1_122 = arith.constant 1 : index
    %c0_123 = arith.constant 0 : index
    %c0_124 = arith.constant 0 : index
    %258 = vector.load %arg15[%c1_122, %c0_123, %c0_124] : memref<2x1x32xf32, #tpu.memory_space<vmem>>, vector<1x1x32xf32>
    %259 = vector.shape_cast %258 : vector<1x1x32xf32> to vector<1x32xf32>
    %c1_125 = arith.constant 1 : index
    %c0_126 = arith.constant 0 : index
    %c0_127 = arith.constant 0 : index
    %260 = vector.load %arg16[%c1_125, %c0_126, %c0_127] : memref<2x1x32xf32, #tpu.memory_space<vmem>>, vector<1x1x32xf32>
    %261 = vector.shape_cast %260 : vector<1x1x32xf32> to vector<1x32xf32>
    %cst_128 = arith.constant dense<0.000000e+00> : vector<16xf32>
    %262 = vector.multi_reduction <add>, %257, %cst_128 [1] : vector<16x32xf32> to vector<16xf32>
    %263 = vector.shape_cast %262 : vector<16xf32> to vector<16x1xf32>
    %cst_129 = arith.constant 3.200000e+01 : f32
    %264 = vector.broadcast %cst_129 : f32 to vector<16x1xf32>
    %265 = arith.divf %263, %264 : vector<16x1xf32>
    %266 = vector.broadcast %265 : vector<16x1xf32> to vector<16x32xf32>
    %267 = arith.subf %257, %266 : vector<16x32xf32>
    %268 = arith.mulf %267, %267 : vector<16x32xf32>
    %cst_130 = arith.constant dense<0.000000e+00> : vector<16xf32>
    %269 = vector.multi_reduction <add>, %268, %cst_130 [1] : vector<16x32xf32> to vector<16xf32>
    %270 = vector.shape_cast %269 : vector<16xf32> to vector<16x1xf32>
    %cst_131 = arith.constant 3.200000e+01 : f32
    %271 = vector.broadcast %cst_131 : f32 to vector<16x1xf32>
    %272 = arith.divf %270, %271 : vector<16x1xf32>
    %cst_132 = arith.constant 9.99999996E-13 : f32
    %273 = vector.broadcast %cst_132 : f32 to vector<16x1xf32>
    %274 = arith.addf %272, %273 : vector<16x1xf32>
    %275 = math.rsqrt %274 : vector<16x1xf32>
    %276 = vector.broadcast %275 : vector<16x1xf32> to vector<16x32xf32>
    %277 = arith.mulf %267, %276 : vector<16x32xf32>
    %278 = vector.broadcast %259 : vector<1x32xf32> to vector<16x32xf32>
    %279 = arith.mulf %277, %278 : vector<16x32xf32>
    %280 = vector.broadcast %261 : vector<1x32xf32> to vector<16x32xf32>
    %281 = arith.addf %279, %280 : vector<16x32xf32>
    %282 = vector.extract_strided_slice %281 {offsets = [0, 0], sizes = [1, 32], strides = [1, 1]} : vector<16x32xf32> to vector<1x32xf32>
    %283 = vector.extract_strided_slice %281 {offsets = [8, 0], sizes = [1, 32], strides = [1, 1]} : vector<16x32xf32> to vector<1x32xf32>
    %284 = tpu.concatenate %282, %283 in 0 : vector<1x32xf32>, vector<1x32xf32> -> vector<2x32xf32>
    %c0_133 = arith.constant 0 : index
    %c0_134 = arith.constant 0 : index
    %285 = vector.load %arg17[%c0_133, %c0_134] : memref<2x32xf32, #tpu.memory_space<vmem>>, vector<2x32xf32>
    tpu.vector_store %arg17[%c0_133, %c0_134], %284 {strides = array<i32>} : memref<2x32xf32, #tpu.memory_space<vmem>>, vector<2x32xf32>,
    return
  }
  func.func @transform_0(%arg0: i32) -> (i32, i32) {
    %c0_i32 = arith.constant 0 : i32
    %c0_i32_0 = arith.constant 0 : i32
    %c0_i32_1 = arith.constant 0 : i32
    return %c0_i32, %c0_i32_0 : i32, i32
  }
  func.func @transform_1(%arg0: i32) -> (i32, i32) {
    %c0_i32 = arith.constant 0 : i32
    %c0_i32_0 = arith.constant 0 : i32
    %c0_i32_1 = arith.constant 0 : i32
    return %c0_i32, %c0_i32_0 : i32, i32
  }
  func.func @transform_2(%arg0: i32) -> (i32, i32) {
    %c0_i32 = arith.constant 0 : i32
    %c0_i32_0 = arith.constant 0 : i32
    %c0_i32_1 = arith.constant 0 : i32
    return %c0_i32, %c0_i32_0 : i32, i32
  }
  func.func @transform_3(%arg0: i32) -> (i32, i32, i32) {
    %c0_i32 = arith.constant 0 : i32
    %c0_i32_0 = arith.constant 0 : i32
    %c0_i32_1 = arith.constant 0 : i32
    %c0_i32_2 = arith.constant 0 : i32
    return %c0_i32, %c0_i32_0, %c0_i32_1 : i32, i32, i32
  }
  func.func @transform_4(%arg0: i32) -> (i32, i32, i32) {
    %c0_i32 = arith.constant 0 : i32
    %c0_i32_0 = arith.constant 0 : i32
    %c0_i32_1 = arith.constant 0 : i32
    %c0_i32_2 = arith.constant 0 : i32
    return %c0_i32, %c0_i32_0, %c0_i32_1 : i32, i32, i32
  }
  func.func @transform_5(%arg0: i32) -> (i32, i32, i32) {
    %c0_i32 = arith.constant 0 : i32
    %c0_i32_0 = arith.constant 0 : i32
    %c0_i32_1 = arith.constant 0 : i32
    %c0_i32_2 = arith.constant 0 : i32
    return %c0_i32, %c0_i32_0, %c0_i32_1 : i32, i32, i32
  }
  func.func @transform_6(%arg0: i32) -> (i32, i32, i32) {
    %c0_i32 = arith.constant 0 : i32
    %c0_i32_0 = arith.constant 0 : i32
    %c0_i32_1 = arith.constant 0 : i32
    %c0_i32_2 = arith.constant 0 : i32
    return %c0_i32, %c0_i32_0, %c0_i32_1 : i32, i32, i32
  }
  func.func @transform_7(%arg0: i32) -> (i32, i32, i32) {
    %c0_i32 = arith.constant 0 : i32
    %c0_i32_0 = arith.constant 0 : i32
    %c0_i32_1 = arith.constant 0 : i32
    %c0_i32_2 = arith.constant 0 : i32
    return %c0_i32, %c0_i32_0, %c0_i32_1 : i32, i32, i32
  }
  func.func @transform_8(%arg0: i32) -> (i32, i32, i32) {
    %c0_i32 = arith.constant 0 : i32
    %c0_i32_0 = arith.constant 0 : i32
    %c0_i32_1 = arith.constant 0 : i32
    %c0_i32_2 = arith.constant 0 : i32
    return %c0_i32, %c0_i32_0, %c0_i32_1 : i32, i32, i32
  }
  func.func @transform_9(%arg0: i32) -> (i32, i32, i32) {
    %c0_i32 = arith.constant 0 : i32
    %c0_i32_0 = arith.constant 0 : i32
    %c0_i32_1 = arith.constant 0 : i32
    %c0_i32_2 = arith.constant 0 : i32
    return %c0_i32, %c0_i32_0, %c0_i32_1 : i32, i32, i32
  }
  func.func @transform_10(%arg0: i32) -> (i32, i32, i32) {
    %c0_i32 = arith.constant 0 : i32
    %c0_i32_0 = arith.constant 0 : i32
    %c0_i32_1 = arith.constant 0 : i32
    %c0_i32_2 = arith.constant 0 : i32
    return %c0_i32, %c0_i32_0, %c0_i32_1 : i32, i32, i32
  }
  func.func @transform_11(%arg0: i32) -> (i32, i32, i32) {
    %c0_i32 = arith.constant 0 : i32
    %c0_i32_0 = arith.constant 0 : i32
    %c0_i32_1 = arith.constant 0 : i32
    %c0_i32_2 = arith.constant 0 : i32
    return %c0_i32, %c0_i32_0, %c0_i32_1 : i32, i32, i32
  }
  func.func @transform_12(%arg0: i32) -> (i32, i32, i32) {
    %c0_i32 = arith.constant 0 : i32
    %c0_i32_0 = arith.constant 0 : i32
    %c0_i32_1 = arith.constant 0 : i32
    %c0_i32_2 = arith.constant 0 : i32
    return %c0_i32, %c0_i32_0, %c0_i32_1 : i32, i32, i32
  }
  func.func @transform_13(%arg0: i32) -> (i32, i32, i32) {
    %c0_i32 = arith.constant 0 : i32
    %c0_i32_0 = arith.constant 0 : i32
    %c0_i32_1 = arith.constant 0 : i32
    %c0_i32_2 = arith.constant 0 : i32
    return %c0_i32, %c0_i32_0, %c0_i32_1 : i32, i32, i32
  }
  func.func @transform_14(%arg0: i32) -> (i32, i32, i32) {
    %c0_i32 = arith.constant 0 : i32
    %c0_i32_0 = arith.constant 0 : i32
    %c0_i32_1 = arith.constant 0 : i32
    %c0_i32_2 = arith.constant 0 : i32
    return %c0_i32, %c0_i32_0, %c0_i32_1 : i32, i32, i32
  }
  func.func @transform_15(%arg0: i32) -> (i32, i32, i32) {
    %c0_i32 = arith.constant 0 : i32
    %c0_i32_0 = arith.constant 0 : i32
    %c0_i32_1 = arith.constant 0 : i32
    %c0_i32_2 = arith.constant 0 : i32
    return %c0_i32, %c0_i32_0, %c0_i32_1 : i32, i32, i32
  }
  func.func @transform_16(%arg0: i32) -> (i32, i32) {
    %c0_i32 = arith.constant 0 : i32
    %c0_i32_0 = arith.constant 0 : i32
    %c0_i32_1 = arith.constant 0 : i32
    return %c0_i32, %c0_i32_0 : i32, i32
  }
}

</mosaic_0001>

<bundles_post_ra>
// kernel: text_encoder_forward.1
= control target key start
LH: loop header
LB: loop body
LE: loop exit
PB: predicated region body
PF: predicated region fallthrough
CT: control target
= control target key end

     0   :  { %s2767_s0 = inlined_call_operand.vmem [shape: f32[16,32], index: 0, kind: input, shape index: {}]   ;;  %s2768_s1 = inlined_call_operand.vmem [shape: f32[1,32], index: 1, kind: input, shape index: {}]   ;;  %s2769_s2 = inlined_call_operand.vmem [shape: f32[1,32], index: 2, kind: input, shape index: {}]   ;;  %s2770_s3 = inlined_call_operand.vmem [shape: f32[2,1,8], index: 3, kind: input, shape index: {}]   ;;  %s2771_s4 = inlined_call_operand.vmem [shape: bf16[2,32,96], index: 4, kind: input, shape index: {}]   ;;  %s2772_s5 = inlined_call_operand.vmem [shape: f32[2,1,96], index: 5, kind: input, shape index: {}]   ;;  %s2773_s6 = inlined_call_operand.vmem [shape: bf16[2,32,32], index: 6, kind: input, shape index: {}]   ;;  %s2774_s7 = inlined_call_operand.vmem [shape: f32[2,1,32], index: 7, kind: input, shape index: {}]   ;;  %s2775_s8 = inlined_call_operand.vmem [shape: f32[2,1,32], index: 8, kind: input, shape index: {}]   ;;  %s2776_s9 = inlined_call_operand.vmem [shape: f32[2,1,32], index: 9, kind: input, shape index: {}]   ;;  %s2777_s10 = inlined_call_operand.vmem [shape: bf16[2,32,64], index: 10, kind: input, shape index: {}]   ;;  %s2778_s11 = inlined_call_operand.vmem [shape: f32[2,1,64], index: 11, kind: input, shape index: {}]   ;;  %s2779_s12 = inlined_call_operand.vmem [shape: bf16[2,64,32], index: 12, kind: input, shape index: {}]   ;;  %s2780_s13 = inlined_call_operand.vmem [shape: f32[2,1,32], index: 13, kind: input, shape index: {}]   ;;  %s2781_s14 = inlined_call_operand.vmem [shape: f32[2,1,32], index: 14, kind: input, shape index: {}]   ;;  %s2782_s15 = inlined_call_operand.vmem [shape: f32[2,1,32], index: 15, kind: input, shape index: {}]   ;;  %s2783_s16 = inlined_call_operand.hbm [shape: f32[2,32], index: 16, kind: output, shape index: {}]  }
   0x1   :  { %2785 = sst [smem:[#allocation5_spill]] %s2767_s0 }
   0x2   :  { %s2786_s23 = sld [smem:[#allocation5_spill]]  ;;  %vm59_vm0 = vcmask 261120  }
   0x8   :  { %v55_v0 = vld [vmem:[%s2786_s23] sm:$0xff]  ;;  %v56_v1 = vld [vmem:[%s2786_s23 + $0x8] sm:$0xff] }
   0x9   :  { %v60_v2 = vsel %vm59_vm0, %v55_v0, 0.0  ;;  %v63_v3 = vsel %vm59_vm0, %v56_v1, 0.0 }
   0xa   :  { %61 = vadd.xlane.f32.xlu0 %v60_v2 }
   0xe   :  { %64 = vadd.xlane.f32.xlu0 %v63_v3 }
   0xf   :  { %21 = vsyncpa [#allocation3], 0  ;;  %v2173_v14 = vld [vmem:[%s2771_s4] sm:$0xff]   ;;  %v2277_v15 = vmov 0.0   ;;  %v2174_v16 = vld [vmem:[%s2771_s4 + $0x8] sm:$0xff]   ;;  %vm2278_vm1 = vmmov 0  }
  0x10   :  { %1986 = vmatprep.subr.bf16.mxu1 %v2277_v15  ;;  %2000 = vmatprep.subr.bf16.mxu0 %v2277_v15  ;;  %v1834_v25 = vld [vmem:[%s2768_s1] ss:$0 sm:$0xff]  ;;  %vm190_vm2 = vcmask 130048   ;;  %v2441_v49 = vld [vmem:[%s2770_s3 + $0x1] ss:$0 sm:$0xff]  ;;  %vm286_vm3 = vcmask 64512  }
  0x11   :  { %1987 = vmatpush3.bf16.msra.mxu1 %v2173_v14  ;;  %1990 = vmatprep.mubr.msk.bf16.mxu1 %vm2278_vm1, %v2277_v15  ;;  %v1835_v29 = vld [vmem:[%s2769_s2] ss:$0 sm:$0xff]  ;;  %s2279_s2 = smov 96   ;;  %s2281_s24 = smov 80   ;;  %vm316_vm4 = vcmask 1043456   ;;  %vm870_vm5 = vcmask 523264  }
  0x12   :  { %1988 = vmatprep.subr.bf16.mxu1 %v2277_v15  ;;  %2002 = vmatprep.mubr.msk.bf16.mxu0 %vm2278_vm1, %v2277_v15  ;;  %v1838_v34 = vld [vmem:[%s2772_s5] ss:$0 sm:$0xff]  ;;  %s2282_s25 = smov 112   ;;  %s2283_s26 = smov 48   ;;  %vm1816_vm6 = vcmask 1040384   ;;  %vm1818_vm7 = vcmask 254976  }
  0x13   :  { %v2436_v47 = vld [vmem:[%s2770_s3] ss:$0 sm:$0xff]  ;;  %s2280_s3 = smov 64   ;;  %s2284_s0 = smov 16  }
  0x15   :  { %1989 = vmatpush3.bf16.msra.mxu1 %v2174_v16 }
  0x16   :  { %1994 = vmatprep.subr.bf16.mxu1 %v2277_v15 }
  0x97   :  { %v62_v4 = vpop.xlane.xlu0 %61 }
  0x98   :  { %v67_v5 = vmul.f32 0.03125, %v62_v4 }
  0x9a   :  { %v69_v6 = vsub.f32 %v55_v0, %v67_v5 }
  0x9b   :  { %v65_v7 = vpop.xlane.xlu0 %64 }
  0x9c   :  { %v68_v8 = vmul.f32 0.03125, %v65_v7  ;;  %v71_v9 = vmul.f32 %v69_v6, %v69_v6 }
  0x9e   :  { %v70_v10 = vsub.f32 %v56_v1, %v68_v8  ;;  %v73_v11 = vsel %vm59_vm0, %v71_v9, 0.0 }
  0x9f   :  { %74 = vadd.xlane.f32.xlu1 %v73_v11 }
  0xa0   :  { %v72_v12 = vmul.f32 %v70_v10, %v70_v10 }
  0xa2   :  { %v76_v13 = vsel %vm59_vm0, %v72_v12, 0.0 }
  0xa3   :  { %77 = vadd.xlane.f32.xlu1 %v76_v13 }
 0x12c   :  { %v75_v17 = vpop.xlane.xlu1 %74 }
 0x12d   :  { %v79_v18 = vmul.f32 0.03125, %v75_v17 }
 0x12f   :  { %v81_v19 = vadd.f32 1e-12, %v79_v18 }
 0x130   :  { %v78_v20 = vpop.xlane.xlu1 %77 }
 0x131   :  { %2193 = vrsqrt.f32 %v81_v19  ;;  %v80_v21 = vmul.f32 0.03125, %v78_v20 }
 0x133   :  { %v82_v22 = vadd.f32 1e-12, %v80_v21 }
 0x135   :  { %2195 = vrsqrt.f32 %v82_v22 }
 0x13b   :  { %v2194_v23 = vpop.eup %2193 }
 0x13c   :  { %v85_v24 = vmul.f32 %v2194_v23, %v69_v6 }
 0x13e   :  { %v93_v28 = vmul.f32 %v1834_v25, %v85_v24 }
 0x13f   :  { %v2196_v26 = vpop.eup %2195 }
 0x140   :  { %v86_v27 = vmul.f32 %v2196_v26, %v70_v10  ;;  %v2401_v31 = vadd.f32 %v1835_v29, %v93_v28 }
 0x142   :  { %v94_v30 = vmul.f32 %v1834_v25, %v86_v27 }
 0x144   :  { %v2403_v32 = vadd.f32 %v1835_v29, %v94_v30 }
 0x146   :  { %v117_v33 = vpack.c.bf16 %v2403_v32, %v2401_v31 }
 0x148   :  { %1991 = vmatmul.mubr.msk.bf16.vlgmr.msra.gmra.mrb[0].mxu1 %vm59_vm0, %v117_v33 }
 0x149   :  { %1996 = vmatprep.mubr.msk.bf16.mxu1 %vm2278_vm1, %v2277_v15 }
 0x21b   :  { %v178_v35 = vpop.f32.mrb[0].mxu1 }
 0x21c   :  { %v179_v36 = vadd.f32 %v1838_v34, %v178_v35  ;;  %v1992_v37 = vpop.f32.mrb[1].mxu1 }
 0x21d   :  { %v181_v38 = vpop.f32.mrb[2].mxu1 }
 0x21e   :  { %v2413_v39 = vpack.c.bf16 %v179_v36, %v179_v36  ;;  %v182_v40 = vadd.f32 %v1838_v34, %v181_v38  ;;  %v1993_v41 = vpop.f32.mrb[3].mxu1 }
 0x220   :  { %v2415_v42 = vpack.c.bf16 %v182_v40, %v182_v40  ;;  %188 = vrot.lane.b32.xlu0 %v2413_v39, %s2279_s2 }
 0x222   :  { %238 = vrot.lane.b32.xlu1 %v2415_v42, %s2279_s2 }
 0x292   :  { %v189_v43 = vpop.permute.xlu0 %188 }
 0x293   :  { %v195_v44 = vsel %vm190_vm2, %v189_v43, 0 }
 0x294   :  { %1995 = vmatpush3.bf16.xpose.msra.mxu1 %v195_v44  ;;  %v239_v45 = vpop.permute.xlu1 %238 }
 0x295   :  { %v244_v46 = vsel %vm190_vm2, %v239_v45, 0  ;;  %2006 = vmatprep.subr.bf16.mxu1 %v2277_v15 }
 0x296   :  { %2001 = vmatpush3.bf16.xpose.msra.mxu0 %v244_v46 }
 0x297   :  { %2012 = vmatprep.subr.bf16.mxu0 %v2277_v15 }
 0x29b   :  { %1997 = vmatmul.mubr.msk.bf16.vlgmr.msra.gmra.mrb[4].mxu1 %vm190_vm2, %v2413_v39 }
 0x29c   :  { %2008 = vmatprep.mubr.msk.bf16.mxu1 %vm2278_vm1, %v2277_v15 }
 0x29d   :  { %2003 = vmatmul.mubr.msk.bf16.vlgmr.msra.gmra.mrb[0].mxu0 %vm190_vm2, %v2415_v42 }
 0x29e   :  { %2014 = vmatprep.mubr.msk.bf16.mxu0 %vm2278_vm1, %v2277_v15 }
 0x36e   :  { %v231_v48 = vpop.f32.mrb[4].mxu1 }
 0x36f   :  { %v232_v50 = vadd.f32 %v2436_v47, %v231_v48  ;;  %v1998_v51 = vpop.f32.mrb[5].mxu1 }
 0x370   :  { %v234_v52 = vpop.f32.mrb[6].mxu1  ;;  %v280_v53 = vpop.f32.mrb[0].mxu0 }
 0x371   :  { %v281_v54 = vadd.f32 %v2441_v49, %v280_v53  ;;  %v1999_v55 = vpop.f32.mrb[7].mxu1  ;;  %v2004_v56 = vpop.f32.mrb[1].mxu0  ;;  %v287_v57 = vsel %vm286_vm3, %v232_v50, -inf }
 0x372   :  { %v283_v58 = vpop.f32.mrb[2].mxu0  ;;  %288 = vmax.xlane.f32.xlu1 %v287_v57 }
 0x373   :  { %v2005_v59 = vpop.f32.mrb[3].mxu0  ;;  %v290_v60 = vsel %vm286_vm3, %v281_v54, -inf }
 0x374   :  { %291 = vmax.xlane.f32.xlu0 %v290_v60 }
 0x383   :  { %360 = vrot.lane.b32.xlu1 %v2415_v42, %s2280_s3 }
 0x387   :  { %410 = vrot.lane.b32.xlu1 %v2413_v39, %s2281_s24 }
 0x3ff   :  { %v289_v61 = vpop.xlane.xlu1 %288 }
 0x400   :  { %v293_v62 = vsub.f32 %v232_v50, %v289_v61 }
 0x401   :  { %v292_v63 = vpop.xlane.xlu0 %291 }
 0x402   :  { %v295_v0 = vmul.f32 1.442695, %v293_v62  ;;  %v294_v1 = vsub.f32 %v281_v54, %v292_v63 }
 0x403   :  { %v361_v2 = vpop.permute.xlu1 %360 }
 0x404   :  { %2197 = vpow2.f32 %v295_v0  ;;  %v297_v3 = vmul.f32 1.442695, %v294_v1  ;;  %v366_v4 = vsel %vm316_vm4, %v361_v2, 0 }
 0x405   :  { %2013 = vmatpush3.bf16.msra.mxu0 %v366_v4 }
 0x406   :  { %2199 = vpow2.f32 %v297_v3  ;;  %2024 = vmatprep.subr.bf16.mxu0 %v2277_v15 }
 0x407   :  { %v411_v9 = vpop.permute.xlu1 %410 }
 0x408   :  { %v416_v21 = vsel %vm190_vm2, %v411_v9, 0  ;;  %v2176_v9 = vld [vmem:[%s2773_s6 + $0x8] sm:$0xff]  }
 0x40e   :  { %v2198_v5 = vpop.eup %2197 }
 0x40f   :  { %v299_v6 = vsel %vm286_vm3, %v2198_v5, 0.0 }
 0x410   :  { %v2200_v7 = vpop.eup %2199  ;;  %300 = vadd.xlane.f32.xlu0 %v299_v6 }
 0x411   :  { %v302_v8 = vsel %vm286_vm3, %v2200_v7, 0.0 }
 0x412   :  { %303 = vadd.xlane.f32.xlu1 %v302_v8  ;;  %v2175_v8 = vld [vmem:[%s2773_s6] sm:$0xff]  }
 0x423   :  { %460 = vrot.lane.b32.xlu1 %v2415_v42, %s2281_s24 }
 0x426   :  { %311 = vrot.lane.b32.xlu0 %v2413_v39, %s2280_s3 }
 0x427   :  { %458 = vrot.lane.b32.xlu1 %v2415_v42, %s2282_s25 }
 0x42a   :  { %408 = vrot.lane.b32.xlu0 %v2413_v39, %s2282_s25 }
 0x49d   :  { %v301_v10 = vpop.xlane.xlu0 %300 }
 0x49e   :  { %2201 = vrcp.f32 %v301_v10 }
 0x49f   :  { %v304_v11 = vpop.xlane.xlu1 %303 }
 0x4a0   :  { %2203 = vrcp.f32 %v304_v11 }
 0x4a1   :  { %v312_v12 = vpop.permute.xlu0 %311 }
 0x4a2   :  { %v318_v13 = vsel %vm316_vm4, %v312_v12, 0 }
 0x4a3   :  { %2007 = vmatpush3.bf16.msra.mxu1 %v318_v13  ;;  %v461_v20 = vpop.permute.xlu1 %460 }
 0x4a4   :  { %2018 = vmatprep.subr.bf16.mxu1 %v2277_v15  ;;  %v466_v23 = vsel %vm190_vm2, %v461_v20, 0 }
 0x4a5   :  { %v409_v24 = vpop.permute.xlu0 %408 }
 0x4a7   :  { %v459_v25 = vpop.permute.xlu1 %458 }
 0x4a8   :  { %v2202_v14 = vpop.eup %2201 }
 0x4a9   :  { %v307_v16 = vmul.f32 %v2202_v14, %v2198_v5 }
 0x4aa   :  { %v2204_v17 = vpop.eup %2203 }
 0x4ab   :  { %v308_v18 = vmul.f32 %v2204_v17, %v2200_v7  ;;  %v309_v19 = vpack.c.bf16 %v307_v16, %v307_v16 }
 0x4ad   :  { %2009 = vmatmul.mubr.msk.bf16.vlgmr.msra.gmra.mrb[8].mxu1 %vm286_vm3, %v309_v19  ;;  %v310_v22 = vpack.c.bf16 %v308_v18, %v308_v18 }
 0x4ae   :  { %2019 = vmatpush3.bf16.xpose.msra.mxu1 %v416_v21  ;;  %2020 = vmatprep.mubr.msk.bf16.mxu1 %vm2278_vm1, %v2277_v15 }
 0x4af   :  { %2015 = vmatmul.mubr.msk.bf16.vlgmr.msra.gmra.mrb[4].mxu0 %vm286_vm3, %v310_v22  ;;  %2030 = vmatprep.subr.bf16.mxu1 %v2277_v15 }
 0x4b0   :  { %2025 = vmatpush3.bf16.xpose.msra.mxu0 %v466_v23  ;;  %2026 = vmatprep.mubr.msk.bf16.mxu0 %vm2278_vm1, %v2277_v15 }
 0x4b1   :  { %2036 = vmatprep.subr.bf16.mxu0 %v2277_v15 }
 0x4b5   :  { %2021 = vmatmul.mubr.msk.bf16.vlgmr.msra.gmra.mrb[12].mxu1 %vm190_vm2, %v409_v24 }
 0x4b6   :  { %2032 = vmatprep.mubr.msk.bf16.mxu1 %vm2278_vm1, %v2277_v15 }
 0x4b7   :  { %2027 = vmatmul.mubr.msk.bf16.vlgmr.msra.gmra.mrb[8].mxu0 %vm190_vm2, %v459_v25 }
 0x4b8   :  { %2038 = vmatprep.mubr.msk.bf16.mxu0 %vm2278_vm1, %v2277_v15 }
 0x580   :  { %v2481_v26 = vpop.f32.mrb[8].mxu1 }
 0x581   :  { %v2010_v27 = vpop.f32.mrb[9].mxu1 }
 0x582   :  { %v357_v28 = vpop.f32.mrb[10].mxu1  ;;  %v2483_v29 = vpop.f32.mrb[4].mxu0  ;;  %v1850_v27 = vld [vmem:[%s2774_s7] ss:$0 sm:$0xff] }
 0x583   :  { %v2011_v30 = vpop.f32.mrb[11].mxu1  ;;  %v2016_v33 = vpop.f32.mrb[5].mxu0 }
 0x584   :  { %v405_v34 = vpop.f32.mrb[6].mxu0 }
 0x585   :  { %v2017_v35 = vpop.f32.mrb[7].mxu0 }
 0x588   :  { %v452_v36 = vpop.f32.mrb[12].mxu1 }
 0x589   :  { %v453_v37 = vadd.f32 %v2436_v47, %v452_v36  ;;  %v2022_v38 = vpop.f32.mrb[13].mxu1 }
 0x58a   :  { %v455_v40 = vpop.f32.mrb[14].mxu1  ;;  %v502_v41 = vpop.f32.mrb[8].mxu0 }
 0x58b   :  { %v503_v43 = vadd.f32 %v2441_v49, %v502_v41  ;;  %v2023_v44 = vpop.f32.mrb[15].mxu1  ;;  %v2028_v45 = vpop.f32.mrb[9].mxu0  ;;  %v508_v46 = vsel %vm286_vm3, %v453_v37, -inf }
 0x58c   :  { %v505_v48 = vpop.f32.mrb[10].mxu0  ;;  %509 = vmax.xlane.f32.xlu0 %v508_v46 }
 0x58d   :  { %v2029_v50 = vpop.f32.mrb[11].mxu0  ;;  %v511_v51 = vsel %vm286_vm3, %v503_v43, -inf }
 0x58e   :  { %512 = vmax.xlane.f32.xlu1 %v511_v51 }
 0x59f   :  { %580 = vrot.lane.b32.xlu1 %v2415_v42, %s2283_s26 }
 0x619   :  { %v510_v52 = vpop.xlane.xlu0 %509 }
 0x61a   :  { %v514_v53 = vsub.f32 %v453_v37, %v510_v52  ;;  %v2178_v52 = vld [vmem:[%s2777_s10 + $0x8] sm:$0xff]  }
 0x61b   :  { %v513_v54 = vpop.xlane.xlu1 %512 }
 0x61c   :  { %v516_v55 = vmul.f32 1.442695, %v514_v53  ;;  %v515_v56 = vsub.f32 %v503_v43, %v513_v54 }
 0x61e   :  { %2205 = vpow2.f32 %v516_v55  ;;  %v518_v57 = vmul.f32 1.442695, %v515_v56 }
 0x61f   :  { %v581_v58 = vpop.permute.xlu1 %580 }
 0x620   :  { %2207 = vpow2.f32 %v518_v57  ;;  %v586_v59 = vsel %vm316_vm4, %v581_v58, 0 }
 0x621   :  { %2037 = vmatpush3.bf16.msra.mxu0 %v586_v59 }
 0x622   :  { %2050 = vmatprep.subr.bf16.mxu0 %v2277_v15 }
 0x628   :  { %v2206_v60 = vpop.eup %2205 }
 0x629   :  { %v520_v61 = vsel %vm286_vm3, %v2206_v60, 0.0 }
 0x62a   :  { %v2208_v62 = vpop.eup %2207  ;;  %521 = vadd.xlane.f32.xlu0 %v520_v61  ;;  %v1854_v61 = vld [vmem:[%s2775_s8] ss:$0 sm:$0xff] }
 0x62b   :  { %v523_v42 = vsel %vm286_vm3, %v2208_v62, 0.0 }
 0x62e   :  { %524 = vadd.xlane.f32.xlu0 %v523_v42 }
 0x644   :  { %532 = vrot.lane.b32.xlu0 %v2413_v39, %s2283_s26 }
 0x6b7   :  { %v522_v63 = vpop.xlane.xlu0 %521 }
 0x6b8   :  { %2209 = vrcp.f32 %v522_v63 }
 0x6bb   :  { %v525_v0 = vpop.xlane.xlu0 %524 }
 0x6bc   :  { %2211 = vrcp.f32 %v525_v0  ;;  %v1855_v0 = vld [vmem:[%s2776_s9] ss:$0 sm:$0xff] }
 0x6bf   :  { %v533_v1 = vpop.permute.xlu0 %532 }
 0x6c0   :  { %v538_v2 = vsel %vm316_vm4, %v533_v1, 0 }
 0x6c1   :  { %2031 = vmatpush3.bf16.msra.mxu1 %v538_v2 }
 0x6c2   :  { %v2210_v3 = vpop.eup %2209  ;;  %2042 = vmatprep.subr.bf16.mxu1 %v2277_v15 }
 0x6c3   :  { %v528_v4 = vmul.f32 %v2210_v3, %v2206_v60 }
 0x6c5   :  { %v530_v5 = vpack.c.bf16 %v528_v4, %v528_v4 }
 0x6c6   :  { %v2212_v6 = vpop.eup %2211 }
 0x6c7   :  { %v529_v7 = vmul.f32 %v2212_v6, %v2208_v62  ;;  %2033 = vmatmul.mubr.msk.bf16.vlgmr.msra.gmra.mrb[16].mxu1 %vm286_vm3, %v530_v5  ;;  %v2179_v5 = vld [vmem:[%s2779_s12] sm:$0xff]   ;;  %v2180_v6 = vld [vmem:[%s2779_s12 + $0x8] sm:$0xff]  }
 0x6c8   :  { %2046 = vmatprep.mubr.msk.bf16.mxu1 %vm2278_vm1, %v2277_v15  ;;  %2043 = vmatpush3.bf16.msra.mxu1 %v2175_v8  ;;  %v1856_v8 = vld [vmem:[%s2778_s11] ss:$0 sm:$0xff] }
 0x6c9   :  { %v531_v39 = vpack.c.bf16 %v529_v7, %v529_v7  ;;  %2044 = vmatprep.subr.bf16.mxu1 %v2277_v15  ;;  %v2181_v7 = vld [vmem:[%s2779_s12 + $0x10] sm:$0xff]  }
 0x6cb   :  { %2039 = vmatmul.mubr.msk.bf16.vlgmr.msra.gmra.mrb[12].mxu0 %vm286_vm3, %v531_v39  ;;  %v2182_v39 = vld [vmem:[%s2779_s12 + $0x18] sm:$0xff]  }
 0x6cc   :  { %2054 = vmatprep.mubr.msk.bf16.mxu0 %vm2278_vm1, %v2277_v15  ;;  %2045 = vmatpush3.bf16.msra.mxu1 %v2176_v9 }
 0x6cd   :  { %2058 = vmatprep.subr.bf16.mxu1 %v2277_v15 }
 0x79a   :  { %v574_v10 = vpop.f32.mrb[16].mxu1 }
 0x79b   :  { %v2034_v11 = vpop.f32.mrb[17].mxu1 }
 0x79c   :  { %v577_v12 = vpop.f32.mrb[18].mxu1 }
 0x79d   :  { %v2035_v13 = vpop.f32.mrb[19].mxu1 }
 0x79e   :  { %v622_v14 = vpop.f32.mrb[12].mxu0 }
 0x79f   :  { %v2163_v16 = vpack.i.bf16 %v622_v14, %v574_v10  ;;  %v2040_v17 = vpop.f32.mrb[13].mxu0 }
 0x7a0   :  { %v625_v18 = vpop.f32.mrb[14].mxu0 }
 0x7a1   :  { %v2041_v19 = vpop.f32.mrb[15].mxu0  ;;  %2164 = vrot.lane.b32.xlu1 %v2163_v16, %s2284_s0 }
 0x813   :  { %v2165_v20 = vpop.permute.xlu1 %2164 }
 0x814   :  { %v2167_v21 = vunpack.i.h.bf16 %v2165_v20  ;;  %v2166_v22 = vunpack.i.l.bf16 %v2165_v20 }
 0x816   :  { %v637_v23 = vsel %vm190_vm2, %v2483_v29, %v2167_v21  ;;  %v636_v24 = vsel %vm190_vm2, %v2481_v26, %v2166_v22 }
 0x817   :  { %v638_v25 = vpack.c.bf16 %v637_v23, %v636_v24 }
 0x819   :  { %2047 = vmatmul.mubr.msk.bf16.vlgmr.msra.gmra.mrb[20].mxu1 %vm59_vm0, %v638_v25 }
 0x81a   :  { %2066 = vmatprep.mubr.msk.bf16.mxu1 %vm2278_vm1, %v2277_v15  ;;  %2059 = vmatpush3.bf16.msra.mxu1 %v2179_v5 }
 0x81b   :  { %2060 = vmatprep.subr.bf16.mxu1 %v2277_v15 }
 0x81e   :  { %2061 = vmatpush3.bf16.msra.mxu1 %v2180_v6  ;;  %v1873_v6 = vld [vmem:[%s2772_s5 + $0x1] ss:$0 sm:$0xff] }
 0x81f   :  { %2062 = vmatprep.subr.bf16.mxu1 %v2277_v15 }
 0x822   :  { %2063 = vmatpush3.bf16.msra.mxu1 %v2181_v7 }
 0x823   :  { %2064 = vmatprep.subr.bf16.mxu1 %v2277_v15 }
 0x826   :  { %2065 = vmatpush3.bf16.msra.mxu1 %v2182_v39 }
 0x827   :  { %2084 = vmatprep.subr.bf16.mxu1 %v2277_v15 }
 0x8ec   :  { %v699_v28 = vpop.f32.mrb[20].mxu1 }
 0x8ed   :  { %v700_v30 = vadd.f32 %v1850_v27, %v699_v28  ;;  %v2048_v33 = vpop.f32.mrb[21].mxu1  ;;  %v1860_v28 = vld [vmem:[%s2780_s13] ss:$0 sm:$0xff] }
 0x8ee   :  { %v702_v34 = vpop.f32.mrb[22].mxu1 }
 0x8ef   :  { %v703_v35 = vadd.f32 %v1850_v27, %v702_v34  ;;  %v2049_v36 = vpop.f32.mrb[23].mxu1  ;;  %v706_v29 = vadd.f32 %v700_v30, %v2401_v31 }
 0x8f1   :  { %v710_v26 = vsel %vm59_vm0, %v706_v29, 0.0  ;;  %v707_v37 = vadd.f32 %v703_v35, %v2403_v32  ;;  %v2177_v32 = vld [vmem:[%s2777_s10] sm:$0xff]  }
 0x8f2   :  { %711 = vadd.xlane.f32.xlu1 %v710_v26  ;;  %2051 = vmatpush3.bf16.msra.mxu0 %v2177_v32 }
 0x8f3   :  { %v713_v38 = vsel %vm59_vm0, %v707_v37, 0.0  ;;  %2052 = vmatprep.subr.bf16.mxu0 %v2277_v15 }
 0x8f4   :  { %714 = vadd.xlane.f32.xlu0 %v713_v38 }
 0x8f6   :  { %2053 = vmatpush3.bf16.msra.mxu0 %v2178_v52  ;;  %v2183_v52 = vld [vmem:[%s2771_s4 + $0x10] sm:$0xff]  }
 0x8f7   :  { %2070 = vmatprep.subr.bf16.mxu0 %v2277_v15 }
 0x97f   :  { %v712_v40 = vpop.xlane.xlu1 %711 }
 0x980   :  { %v716_v41 = vmul.f32 0.03125, %v712_v40 }
 0x981   :  { %v715_v43 = vpop.xlane.xlu0 %714 }
 0x982   :  { %v718_v44 = vsub.f32 %v706_v29, %v716_v41  ;;  %v717_v45 = vmul.f32 0.03125, %v715_v43 }
 0x984   :  { %v719_v46 = vsub.f32 %v707_v37, %v717_v45  ;;  %v720_v48 = vmul.f32 %v718_v44, %v718_v44 }
 0x986   :  { %v722_v50 = vsel %vm59_vm0, %v720_v48, 0.0  ;;  %v721_v51 = vmul.f32 %v719_v46, %v719_v46 }
 0x987   :  { %723 = vadd.xlane.f32.xlu0 %v722_v50 }
 0x988   :  { %v725_v31 = vsel %vm59_vm0, %v721_v51, 0.0 }
 0x98b   :  { %726 = vadd.xlane.f32.xlu0 %v725_v31 }
 0xa14   :  { %v724_v53 = vpop.xlane.xlu0 %723 }
 0xa15   :  { %v728_v54 = vmul.f32 0.03125, %v724_v53  ;;  %v2184_v53 = vld [vmem:[%s2771_s4 + $0x18] sm:$0xff]  }
 0xa17   :  { %v730_v55 = vadd.f32 1e-12, %v728_v54 }
 0xa18   :  { %v727_v56 = vpop.xlane.xlu0 %726 }
 0xa19   :  { %2213 = vrsqrt.f32 %v730_v55  ;;  %v729_v57 = vmul.f32 0.03125, %v727_v56 }
 0xa1b   :  { %v731_v58 = vadd.f32 1e-12, %v729_v57 }
 0xa1d   :  { %2215 = vrsqrt.f32 %v731_v58 }
 0xa23   :  { %v2214_v59 = vpop.eup %2213 }
 0xa24   :  { %v734_v60 = vmul.f32 %v2214_v59, %v718_v44 }
 0xa26   :  { %v742_v42 = vmul.f32 %v1854_v61, %v734_v60 }
 0xa27   :  { %v2216_v62 = vpop.eup %2215 }
 0xa28   :  { %v735_v63 = vmul.f32 %v2216_v62, %v719_v46  ;;  %v750_v2 = vadd.f32 %v1855_v0, %v742_v42 }
 0xa2a   :  { %v743_v1 = vmul.f32 %v1854_v61, %v735_v63  ;;  %v1866_v61 = vld [vmem:[%s2781_s14] ss:$0 sm:$0xff] }
 0xa2c   :  { %v751_v3 = vadd.f32 %v1855_v0, %v743_v1  ;;  %v1867_v1 = vld [vmem:[%s2782_s15] ss:$0 sm:$0xff] }
 0xa2e   :  { %v752_v4 = vpack.c.bf16 %v751_v3, %v750_v2 }
 0xa30   :  { %2055 = vmatmul.mubr.msk.bf16.vlgmr.msra.gmra.mrb[16].mxu0 %vm59_vm0, %v752_v4 }
 0xa31   :  { %2074 = vmatprep.mubr.msk.bf16.mxu0 %vm2278_vm1, %v2277_v15  ;;  %2071 = vmatpush3.bf16.msra.mxu0 %v2183_v52 }
 0xa32   :  { %2072 = vmatprep.subr.bf16.mxu0 %v2277_v15 }
 0xa35   :  { %2073 = vmatpush3.bf16.msra.mxu0 %v2184_v53 }
 0xa36   :  { %2078 = vmatprep.subr.bf16.mxu0 %v2277_v15 }
 0xb03   :  { %v813_v9 = vpop.f32.mrb[16].mxu0 }
 0xb04   :  { %v814_v10 = vadd.f32 %v1856_v8, %v813_v9  ;;  %v2056_v11 = vpop.f32.mrb[17].mxu0 }
 0xb05   :  { %v816_v12 = vpop.f32.mrb[18].mxu0 }
 0xb06   :  { %v822_v13 = vmul.f32 0.70710677, %v814_v10  ;;  %v817_v14 = vadd.f32 %v1856_v8, %v816_v12  ;;  %v2057_v16 = vpop.f32.mrb[19].mxu0  ;;  %v820_v21 = vmul.f32 0.5, %v814_v10 }
 0xb08   :  { %2217 = verf.f32 %v822_v13  ;;  %v823_v17 = vmul.f32 0.70710677, %v817_v14  ;;  %v821_v22 = vmul.f32 0.5, %v817_v14 }
 0xb0a   :  { %2219 = verf.f32 %v823_v17 }
 0xb12   :  { %v2218_v18 = vpop.eup %2217 }
 0xb13   :  { %v826_v19 = vadd.f32 1.0, %v2218_v18 }
 0xb14   :  { %v2220_v20 = vpop.eup %2219 }
 0xb15   :  { %v827_v23 = vadd.f32 1.0, %v2220_v20  ;;  %v828_v24 = vmul.f32 %v826_v19, %v820_v21 }
 0xb17   :  { %v829_v25 = vmul.f32 %v827_v23, %v821_v22 }
 0xb19   :  { %v830_v27 = vpack.c.bf16 %v829_v25, %v828_v24 }
 0xb1b   :  { %2067 = vmatmul.mubr.msk.bf16.vlgmr.msra.gmra.mrb[24].mxu1 %vm870_vm5, %v830_v27 }
 0xb1c   :  { %2086 = vmatprep.mubr.msk.bf16.mxu1 %vm2278_vm1, %v2277_v15 }
 0xbee   :  { %v908_v30 = vpop.f32.mrb[24].mxu1 }
 0xbef   :  { %v909_v33 = vadd.f32 %v1860_v28, %v908_v30  ;;  %v2068_v34 = vpop.f32.mrb[25].mxu1 }
 0xbf0   :  { %v911_v35 = vpop.f32.mrb[26].mxu1 }
 0xbf1   :  { %v912_v36 = vadd.f32 %v1860_v28, %v911_v35  ;;  %v2069_v29 = vpop.f32.mrb[27].mxu1  ;;  %v915_v26 = vadd.f32 %v909_v33, %v750_v2 }
 0xbf3   :  { %v919_v37 = vsel %vm59_vm0, %v915_v26, 0.0  ;;  %v916_v38 = vadd.f32 %v912_v36, %v751_v3 }
 0xbf4   :  { %920 = vadd.xlane.f32.xlu1 %v919_v37 }
 0xbf5   :  { %v922_v40 = vsel %vm59_vm0, %v916_v38, 0.0 }
 0xbf6   :  { %923 = vadd.xlane.f32.xlu0 %v922_v40 }
 0xc81   :  { %v921_v41 = vpop.xlane.xlu1 %920 }
 0xc82   :  { %v925_v43 = vmul.f32 0.03125, %v921_v41 }
 0xc83   :  { %v924_v44 = vpop.xlane.xlu0 %923 }
 0xc84   :  { %v927_v45 = vsub.f32 %v915_v26, %v925_v43  ;;  %v926_v46 = vmul.f32 0.03125, %v924_v44 }
 0xc86   :  { %v928_v48 = vsub.f32 %v916_v38, %v926_v46  ;;  %v929_v50 = vmul.f32 %v927_v45, %v927_v45 }
 0xc88   :  { %v931_v51 = vsel %vm59_vm0, %v929_v50, 0.0  ;;  %v930_v31 = vmul.f32 %v928_v48, %v928_v48 }
 0xc89   :  { %932 = vadd.xlane.f32.xlu1 %v931_v51 }
 0xc8a   :  { %v934_v32 = vsel %vm59_vm0, %v930_v31, 0.0 }
 0xc8b   :  { %935 = vadd.xlane.f32.xlu0 %v934_v32 }
 0xd16   :  { %v933_v54 = vpop.xlane.xlu1 %932 }
 0xd17   :  { %v937_v55 = vmul.f32 0.03125, %v933_v54 }
 0xd18   :  { %v936_v56 = vpop.xlane.xlu0 %935 }
 0xd19   :  { %v939_v57 = vadd.f32 1e-12, %v937_v55  ;;  %v938_v58 = vmul.f32 0.03125, %v936_v56 }
 0xd1b   :  { %2221 = vrsqrt.f32 %v939_v57  ;;  %v940_v59 = vadd.f32 1e-12, %v938_v58 }
 0xd1d   :  { %2223 = vrsqrt.f32 %v940_v59 }
 0xd25   :  { %v2222_v60 = vpop.eup %2221 }
 0xd26   :  { %v943_v62 = vmul.f32 %v2222_v60, %v927_v45 }
 0xd27   :  { %v2224_v42 = vpop.eup %2223 }
 0xd28   :  { %v951_v63 = vmul.f32 %v1866_v61, %v943_v62  ;;  %v944_v0 = vmul.f32 %v2224_v42, %v928_v48 }
 0xd2a   :  { %v952_v2 = vmul.f32 %v1866_v61, %v944_v0  ;;  %v2590_v3 = vadd.f32 %v1867_v1, %v951_v63 }
 0xd2c   :  { %v2592_v4 = vadd.f32 %v1867_v1, %v952_v2 }
 0xd2e   :  { %v961_v5 = vpack.c.bf16 %v2592_v4, %v2590_v3 }
 0xd30   :  { %2075 = vmatmul.mubr.msk.bf16.vlgmr.msra.gmra.mrb[20].mxu0 %vm59_vm0, %v961_v5 }
 0xd31   :  { %2080 = vmatprep.mubr.msk.bf16.mxu0 %vm2278_vm1, %v2277_v15 }
 0xe03   :  { %v1024_v7 = vpop.f32.mrb[20].mxu0 }
 0xe04   :  { %v1025_v39 = vadd.f32 %v1873_v6, %v1024_v7  ;;  %v2076_v8 = vpop.f32.mrb[21].mxu0 }
 0xe05   :  { %v1027_v9 = vpop.f32.mrb[22].mxu0 }
 0xe06   :  { %v2602_v10 = vpack.c.bf16 %v1025_v39, %v1025_v39  ;;  %v1028_v11 = vadd.f32 %v1873_v6, %v1027_v9  ;;  %v2077_v12 = vpop.f32.mrb[23].mxu0 }
 0xe08   :  { %v2604_v13 = vpack.c.bf16 %v1028_v11, %v1028_v11  ;;  %1034 = vrot.lane.b32.xlu1 %v2602_v10, %s2279_s2 }
 0xe0a   :  { %1083 = vrot.lane.b32.xlu0 %v2604_v13, %s2279_s2 }
 0xe7a   :  { %v1035_v14 = vpop.permute.xlu1 %1034 }
 0xe7b   :  { %v1040_v16 = vsel %vm190_vm2, %v1035_v14, 0 }
 0xe7c   :  { %2079 = vmatpush3.bf16.xpose.msra.mxu0 %v1040_v16  ;;  %v1084_v17 = vpop.permute.xlu0 %1083 }
 0xe7d   :  { %v1089_v18 = vsel %vm190_vm2, %v1084_v17, 0  ;;  %2090 = vmatprep.subr.bf16.mxu0 %v2277_v15 }
 0xe7e   :  { %2085 = vmatpush3.bf16.xpose.msra.mxu1 %v1089_v18 }
 0xe7f   :  { %2096 = vmatprep.subr.bf16.mxu1 %v2277_v15 }
 0xe83   :  { %2081 = vmatmul.mubr.msk.bf16.vlgmr.msra.gmra.mrb[24].mxu0 %vm190_vm2, %v2602_v10 }
 0xe84   :  { %2092 = vmatprep.mubr.msk.bf16.mxu0 %vm2278_vm1, %v2277_v15 }
 0xe85   :  { %2087 = vmatmul.mubr.msk.bf16.vlgmr.msra.gmra.mrb[28].mxu1 %vm190_vm2, %v2604_v13 }
 0xe86   :  { %2098 = vmatprep.mubr.msk.bf16.mxu1 %vm2278_vm1, %v2277_v15 }
 0xf56   :  { %v1076_v19 = vpop.f32.mrb[24].mxu0 }
 0xf57   :  { %v1077_v20 = vadd.f32 %v2436_v47, %v1076_v19  ;;  %v2082_v21 = vpop.f32.mrb[25].mxu0 }
 0xf58   :  { %v1079_v22 = vpop.f32.mrb[26].mxu0  ;;  %v1125_v23 = vpop.f32.mrb[28].mxu1 }
 0xf59   :  { %v1126_v24 = vadd.f32 %v2441_v49, %v1125_v23  ;;  %v2083_v25 = vpop.f32.mrb[27].mxu0  ;;  %v2088_v27 = vpop.f32.mrb[29].mxu1  ;;  %v1131_v28 = vsel %vm286_vm3, %v1077_v20, -inf }
 0xf5a   :  { %1132 = vmax.xlane.f32.xlu1 %v1131_v28  ;;  %v1128_v30 = vpop.f32.mrb[30].mxu1 }
 0xf5b   :  { %v2089_v33 = vpop.f32.mrb[31].mxu1  ;;  %v1134_v34 = vsel %vm286_vm3, %v1126_v24, -inf }
 0xf5c   :  { %1135 = vmax.xlane.f32.xlu0 %v1134_v34 }
 0xf6b   :  { %1155 = vrot.lane.b32.xlu1 %v2602_v10, %s2280_s3 }
 0xfe7   :  { %v1133_v35 = vpop.xlane.xlu1 %1132 }
 0xfe8   :  { %v1137_v36 = vsub.f32 %v1077_v20, %v1133_v35 }
 0xfe9   :  { %v1136_v29 = vpop.xlane.xlu0 %1135 }
 0xfea   :  { %v1139_v26 = vmul.f32 1.442695, %v1137_v36  ;;  %v1138_v37 = vsub.f32 %v1126_v24, %v1136_v29 }
 0xfeb   :  { %v1156_v38 = vpop.permute.xlu1 %1155 }
 0xfec   :  { %2225 = vpow2.f32 %v1139_v26  ;;  %v1141_v40 = vmul.f32 1.442695, %v1138_v37  ;;  %v1161_v41 = vsel %vm316_vm4, %v1156_v38, 0 }
 0xfed   :  { %2091 = vmatpush3.bf16.msra.mxu0 %v1161_v41 }
 0xfee   :  { %2227 = vpow2.f32 %v1141_v40  ;;  %2102 = vmatprep.subr.bf16.mxu0 %v2277_v15 }
 0xff6   :  { %v2226_v43 = vpop.eup %2225 }
 0xff7   :  { %v1143_v44 = vsel %vm286_vm3, %v2226_v43, 0.0 }
 0xff8   :  { %v2228_v45 = vpop.eup %2227  ;;  %1144 = vadd.xlane.f32.xlu1 %v1143_v44  ;;  %v2185_v44 = vld [vmem:[%s2773_s6 + $0x10] sm:$0xff]  }
 0xff9   :  { %v1146_v46 = vsel %vm286_vm3, %v2228_v45, 0.0 }
 0xffa   :  { %1147 = vadd.xlane.f32.xlu0 %v1146_v46 }
0x1009   :  { %1253 = vrot.lane.b32.xlu1 %v2602_v10, %s2281_s24 }
0x100d   :  { %1303 = vrot.lane.b32.xlu1 %v2604_v13, %s2281_s24 }
0x1010   :  { %1203 = vrot.lane.b32.xlu0 %v2604_v13, %s2280_s3  ;;  %s2285_s3 = smov [#allocation2]  }
0x1011   :  { %1251 = vrot.lane.b32.xlu1 %v2602_v10, %s2282_s25  ;;  %s1826_s24 = sshll.u32 %s2285_s3, 4  ;;  %s1827_s24 = int_to_ptr.vmem [resolvable:$true] %s1826_s24 }
0x1012   :  { %p2258_p1 = scmp.lt.s32.totalorder %s1827_s24, %s1827_s24 }
0x1014   :  { %1301 = vrot.lane.b32.xlu0 %v2604_v13, %s2282_s25 }
0x1085   :  { %v1145_v48 = vpop.xlane.xlu1 %1144 }
0x1086   :  { %2229 = vrcp.f32 %v1145_v48 }
0x1087   :  { %v1148_v50 = vpop.xlane.xlu0 %1147 }
0x1088   :  { %2231 = vrcp.f32 %v1148_v50 }
0x1089   :  { %v1254_v32 = vpop.permute.xlu1 %1253 }
0x108a   :  { %v1259_v58 = vsel %vm190_vm2, %v1254_v32, 0 }
0x108b   :  { %v1204_v51 = vpop.permute.xlu0 %1203 }
0x108c   :  { %v1209_v31 = vsel %vm316_vm4, %v1204_v51, 0 }
0x108d   :  { %2097 = vmatpush3.bf16.msra.mxu1 %v1209_v31  ;;  %v1304_v57 = vpop.permute.xlu1 %1303 }
0x108e   :  { %2108 = vmatprep.subr.bf16.mxu1 %v2277_v15  ;;  %v1309_v60 = vsel %vm190_vm2, %v1304_v57, 0 }
0x108f   :  { %v1302_v62 = vpop.permute.xlu0 %1301 }
0x1090   :  { %v2230_v52 = vpop.eup %2229 }
0x1091   :  { %v1151_v53 = vmul.f32 %v2230_v52, %v2226_v43  ;;  %v1252_v61 = vpop.permute.xlu1 %1251 }
0x1092   :  { %v2232_v54 = vpop.eup %2231 }
0x1093   :  { %v1152_v55 = vmul.f32 %v2232_v54, %v2228_v45  ;;  %v1153_v56 = vpack.c.bf16 %v1151_v53, %v1151_v53  ;;  %v2186_v45 = vld [vmem:[%s2773_s6 + $0x18] sm:$0xff]   ;;  %s2253_s6 = scalar_lea.vmem %s1827_s24, 32 }
0x1094   :  { %p2254_p0 = scmp.ne.s32.totalorder %s1827_s24, %s2253_s6  ;;  %p2259_p2 = scmp.lt.s32.totalorder %s2253_s6, %s2253_s6 }
0x1095   :  { %2093 = vmatmul.mubr.msk.bf16.vlgmr.msra.gmra.mrb[28].mxu0 %vm286_vm3, %v1153_v56  ;;  %v1154_v59 = vpack.c.bf16 %v1152_v55, %v1152_v55 }
0x1096   :  { %2103 = vmatpush3.bf16.xpose.msra.mxu0 %v1259_v58  ;;  %2104 = vmatprep.mubr.msk.bf16.mxu0 %vm2278_vm1, %v2277_v15  ;;  %p2260_p3 = por %p2259_p2, %p2258_p1 }
0x1097   :  { %2099 = vmatmul.mubr.msk.bf16.vlgmr.msra.gmra.mrb[32].mxu1 %vm286_vm3, %v1154_v59  ;;  %2114 = vmatprep.subr.bf16.mxu0 %v2277_v15 }
0x1098   :  { %2109 = vmatpush3.bf16.xpose.msra.mxu1 %v1309_v60  ;;  %2110 = vmatprep.mubr.msk.bf16.mxu1 %vm2278_vm1, %v2277_v15  ;;  %p2261_p4 = pnand %p2260_p3, %p2254_p0 }
0x1099   :  { %2120 = vmatprep.subr.bf16.mxu1 %v2277_v15 }
0x109d   :  { %2105 = vmatmul.mubr.msk.bf16.vlgmr.msra.gmra.mrb[32].mxu0 %vm190_vm2, %v1252_v61  ;;  %v1890_v61 = vld [vmem:[%s2774_s7 + $0x1] ss:$0 sm:$0xff] }
0x109e   :  { %2116 = vmatprep.mubr.msk.bf16.mxu0 %vm2278_vm1, %v2277_v15 }
0x109f   :  { %2111 = vmatmul.mubr.msk.bf16.vlgmr.msra.gmra.mrb[36].mxu1 %vm190_vm2, %v1302_v62 }
0x10a0   :  { %2122 = vmatprep.mubr.msk.bf16.mxu1 %vm2278_vm1, %v2277_v15 }
0x1168   :  { %v2660_v42 = vpop.f32.mrb[28].mxu0 }
0x1169   :  { %v2094_v63 = vpop.f32.mrb[29].mxu0 }
0x116a   :  { %v1200_v0 = vpop.f32.mrb[30].mxu0  ;;  %v2662_v1 = vpop.f32.mrb[32].mxu1 }
0x116b   :  { %v2095_v2 = vpop.f32.mrb[31].mxu0  ;;  %v2100_v5 = vpop.f32.mrb[33].mxu1 }
0x116c   :  { %v1248_v6 = vpop.f32.mrb[34].mxu1 }
0x116d   :  { %v2101_v7 = vpop.f32.mrb[35].mxu1 }
0x1170   :  { %v1295_v39 = vpop.f32.mrb[32].mxu0 }
0x1171   :  { %v1296_v8 = vadd.f32 %v2436_v47, %v1295_v39  ;;  %v2106_v9 = vpop.f32.mrb[33].mxu0 }
0x1172   :  { %v1298_v11 = vpop.f32.mrb[34].mxu0  ;;  %v1345_v12 = vpop.f32.mrb[36].mxu1 }
0x1173   :  { %v1346_v14 = vadd.f32 %v2441_v49, %v1345_v12  ;;  %v2107_v16 = vpop.f32.mrb[35].mxu0  ;;  %v2112_v17 = vpop.f32.mrb[37].mxu1  ;;  %v1351_v18 = vsel %vm286_vm3, %v1296_v8, -inf }
0x1174   :  { %1352 = vmax.xlane.f32.xlu1 %v1351_v18  ;;  %v1348_v19 = vpop.f32.mrb[38].mxu1 }
0x1175   :  { %v2113_v20 = vpop.f32.mrb[39].mxu1  ;;  %v1354_v21 = vsel %vm286_vm3, %v1346_v14, -inf }
0x1176   :  { %1355 = vmax.xlane.f32.xlu0 %v1354_v21  ;;  %v2188_v20 = vld [vmem:[%s2777_s10 + $0x18] sm:$0xff]  }
0x1185   :  { %1375 = vrot.lane.b32.xlu1 %v2602_v10, %s2283_s26 }
0x1201   :  { %v1353_v22 = vpop.xlane.xlu1 %1352 }
0x1202   :  { %v1357_v47 = vsub.f32 %v1296_v8, %v1353_v22 }
0x1203   :  { %v1356_v23 = vpop.xlane.xlu0 %1355 }
0x1204   :  { %v1359_v24 = vmul.f32 1.442695, %v1357_v47  ;;  %v1358_v25 = vsub.f32 %v1346_v14, %v1356_v23 }
0x1205   :  { %v1376_v27 = vpop.permute.xlu1 %1375 }
0x1206   :  { %2233 = vpow2.f32 %v1359_v24  ;;  %v1361_v49 = vmul.f32 1.442695, %v1358_v25  ;;  %v1381_v28 = vsel %vm316_vm4, %v1376_v27, 0 }
0x1207   :  { %2115 = vmatpush3.bf16.msra.mxu0 %v1381_v28 }
0x1208   :  { %2235 = vpow2.f32 %v1361_v49  ;;  %2126 = vmatprep.subr.bf16.mxu0 %v2277_v15  ;;  %v1896_v49 = vld [vmem:[%s2775_s8 + $0x1] ss:$0 sm:$0xff] }
0x1210   :  { %v2234_v30 = vpop.eup %2233 }
0x1211   :  { %v1363_v33 = vsel %vm286_vm3, %v2234_v30, 0.0 }
0x1212   :  { %v2236_v34 = vpop.eup %2235  ;;  %1364 = vadd.xlane.f32.xlu0 %v1363_v33 }
0x1213   :  { %v1366_v10 = vsel %vm286_vm3, %v2236_v34, 0.0 }
0x1216   :  { %1367 = vadd.xlane.f32.xlu0 %v1366_v10  ;;  %v1897_v10 = vld [vmem:[%s2776_s9 + $0x1] ss:$0 sm:$0xff] }
0x122c   :  { %1423 = vrot.lane.b32.xlu0 %v2604_v13, %s2283_s26 }
0x129f   :  { %v1365_v35 = vpop.xlane.xlu0 %1364 }
0x12a0   :  { %2237 = vrcp.f32 %v1365_v35 }
0x12a3   :  { %v1368_v36 = vpop.xlane.xlu0 %1367 }
0x12a4   :  { %2239 = vrcp.f32 %v1368_v36 }
0x12a7   :  { %v1424_v29 = vpop.permute.xlu0 %1423 }
0x12a8   :  { %v1429_v26 = vsel %vm316_vm4, %v1424_v29, 0 }
0x12a9   :  { %2121 = vmatpush3.bf16.msra.mxu1 %v1429_v26 }
0x12aa   :  { %v2238_v37 = vpop.eup %2237  ;;  %2134 = vmatprep.subr.bf16.mxu1 %v2277_v15 }
0x12ab   :  { %v1371_v38 = vmul.f32 %v2238_v37, %v2234_v30  ;;  %v2189_v37 = vld [vmem:[%s2779_s12 + $0x20] sm:$0xff]  }
0x12ad   :  { %v1373_v40 = vpack.c.bf16 %v1371_v38, %v1371_v38  ;;  %v2190_v38 = vld [vmem:[%s2779_s12 + $0x28] sm:$0xff]  }
0x12ae   :  { %v2240_v41 = vpop.eup %2239 }
0x12af   :  { %v1372_v43 = vmul.f32 %v2240_v41, %v2236_v34  ;;  %2117 = vmatmul.mubr.msk.bf16.vlgmr.msra.gmra.mrb[36].mxu0 %vm286_vm3, %v1373_v40  ;;  %v2191_v40 = vld [vmem:[%s2779_s12 + $0x30] sm:$0xff]   ;;  %v2192_v41 = vld [vmem:[%s2779_s12 + $0x38] sm:$0xff]  }
0x12b0   :  { %2130 = vmatprep.mubr.msk.bf16.mxu0 %vm2278_vm1, %v2277_v15  ;;  %2127 = vmatpush3.bf16.msra.mxu0 %v2185_v44 }
0x12b1   :  { %v1374_v13 = vpack.c.bf16 %v1372_v43, %v1372_v43  ;;  %2128 = vmatprep.subr.bf16.mxu0 %v2277_v15  ;;  %v1903_v43 = vld [vmem:[%s2778_s11 + $0x1] ss:$0 sm:$0xff] }
0x12b3   :  { %2123 = vmatmul.mubr.msk.bf16.vlgmr.msra.gmra.mrb[40].mxu1 %vm286_vm3, %v1374_v13 }
0x12b4   :  { %2138 = vmatprep.mubr.msk.bf16.mxu1 %vm2278_vm1, %v2277_v15  ;;  %2129 = vmatpush3.bf16.msra.mxu0 %v2186_v45 }
0x12b5   :  { %2142 = vmatprep.subr.bf16.mxu0 %v2277_v15 }
0x1382   :  { %v1417_v46 = vpop.f32.mrb[36].mxu0 }
0x1383   :  { %v2118_v48 = vpop.f32.mrb[37].mxu0 }
0x1384   :  { %v1420_v50 = vpop.f32.mrb[38].mxu0 }
0x1385   :  { %v2119_v51 = vpop.f32.mrb[39].mxu0 }
0x1386   :  { %v1465_v31 = vpop.f32.mrb[40].mxu1 }
0x1387   :  { %v2168_v32 = vpack.i.bf16 %v1465_v31, %v1417_v46  ;;  %v2124_v52 = vpop.f32.mrb[41].mxu1 }
0x1388   :  { %v1468_v53 = vpop.f32.mrb[42].mxu1 }
0x1389   :  { %2169 = vrot.lane.b32.xlu1 %v2168_v32, %s2284_s0  ;;  %v2125_v54 = vpop.f32.mrb[43].mxu1 }
0x13fb   :  { %v2170_v55 = vpop.permute.xlu1 %2169 }
0x13fc   :  { %v2172_v56 = vunpack.i.h.bf16 %v2170_v55  ;;  %v2171_v57 = vunpack.i.l.bf16 %v2170_v55 }
0x13fe   :  { %v1480_v58 = vsel %vm190_vm2, %v2662_v1, %v2172_v56  ;;  %v1479_v59 = vsel %vm190_vm2, %v2660_v42, %v2171_v57 }
0x13ff   :  { %v1481_v60 = vpack.c.bf16 %v1480_v58, %v1479_v59  ;;  %v1916_v59 = vld [vmem:[%s2780_s13 + $0x1] ss:$0 sm:$0xff] }
0x1401   :  { %2131 = vmatmul.mubr.msk.bf16.vlgmr.msra.gmra.mrb[40].mxu0 %vm59_vm0, %v1481_v60 }
0x1402   :  { %2150 = vmatprep.mubr.msk.bf16.mxu0 %vm2278_vm1, %v2277_v15  ;;  %2143 = vmatpush3.bf16.msra.mxu0 %v2189_v37 }
0x1403   :  { %2144 = vmatprep.subr.bf16.mxu0 %v2277_v15 }
0x1406   :  { %2145 = vmatpush3.bf16.msra.mxu0 %v2190_v38 }
0x1407   :  { %2146 = vmatprep.subr.bf16.mxu0 %v2277_v15 }
0x140a   :  { %2147 = vmatpush3.bf16.msra.mxu0 %v2191_v40 }
0x140b   :  { %2148 = vmatprep.subr.bf16.mxu0 %v2277_v15 }
0x140e   :  { %2149 = vmatpush3.bf16.msra.mxu0 %v2192_v41 }
0x14d4   :  { %v1544_v62 = vpop.f32.mrb[40].mxu0 }
0x14d5   :  { %v1545_v63 = vadd.f32 %v1890_v61, %v1544_v62  ;;  %v2132_v0 = vpop.f32.mrb[41].mxu0 }
0x14d6   :  { %v1547_v2 = vpop.f32.mrb[42].mxu0 }
0x14d7   :  { %v1548_v5 = vadd.f32 %v1890_v61, %v1547_v2  ;;  %v2133_v6 = vpop.f32.mrb[43].mxu0  ;;  %v1551_v1 = vadd.f32 %v1545_v63, %v2590_v3 }
0x14d9   :  { %v1557_v42 = vsel %vm59_vm0, %v1551_v1, 0.0  ;;  %v1552_v7 = vadd.f32 %v1548_v5, %v2592_v4  ;;  %v2187_v4 = vld [vmem:[%s2777_s10 + $0x10] sm:$0xff]  }
0x14da   :  { %1558 = vadd.xlane.f32.xlu1 %v1557_v42  ;;  %2135 = vmatpush3.bf16.msra.mxu1 %v2187_v4 }
0x14db   :  { %v1560_v39 = vsel %vm59_vm0, %v1552_v7, 0.0  ;;  %2136 = vmatprep.subr.bf16.mxu1 %v2277_v15 }
0x14dc   :  { %1561 = vadd.xlane.f32.xlu0 %v1560_v39 }
0x14de   :  { %2137 = vmatpush3.bf16.msra.mxu1 %v2188_v20 }
0x1567   :  { %v1559_v8 = vpop.xlane.xlu1 %1558 }
0x1568   :  { %v1563_v9 = vmul.f32 0.03125, %v1559_v8 }
0x1569   :  { %v1562_v11 = vpop.xlane.xlu0 %1561 }
0x156a   :  { %v1565_v12 = vsub.f32 %v1551_v1, %v1563_v9  ;;  %v1564_v14 = vmul.f32 0.03125, %v1562_v11 }
0x156c   :  { %v1566_v16 = vsub.f32 %v1552_v7, %v1564_v14  ;;  %v1567_v17 = vmul.f32 %v1565_v12, %v1565_v12 }
0x156e   :  { %v1569_v18 = vsel %vm59_vm0, %v1567_v17, 0.0  ;;  %v1568_v19 = vmul.f32 %v1566_v16, %v1566_v16 }
0x156f   :  { %1570 = vadd.xlane.f32.xlu0 %v1569_v18 }
0x1570   :  { %v1572_v3 = vsel %vm59_vm0, %v1568_v19, 0.0 }
0x1571   :  { %1573 = vadd.xlane.f32.xlu1 %v1572_v3 }
0x15fc   :  { %v1571_v21 = vpop.xlane.xlu0 %1570 }
0x15fd   :  { %v1575_v22 = vmul.f32 0.03125, %v1571_v21 }
0x15fe   :  { %v1574_v47 = vpop.xlane.xlu1 %1573 }
0x15ff   :  { %v1577_v23 = vadd.f32 1e-12, %v1575_v22  ;;  %v1576_v24 = vmul.f32 0.03125, %v1574_v47 }
0x1601   :  { %2241 = vrsqrt.f32 %v1577_v23  ;;  %v1578_v25 = vadd.f32 1e-12, %v1576_v24 }
0x1603   :  { %2243 = vrsqrt.f32 %v1578_v25  ;;  %v1924_v25 = vld [vmem:[%s2781_s14 + $0x1] ss:$0 sm:$0xff] }
0x160b   :  { %v2242_v27 = vpop.eup %2241 }
0x160c   :  { %v1581_v28 = vmul.f32 %v2242_v27, %v1565_v12 }
0x160d   :  { %v2244_v30 = vpop.eup %2243 }
0x160e   :  { %v1589_v33 = vmul.f32 %v1896_v49, %v1581_v28  ;;  %v1582_v34 = vmul.f32 %v2244_v30, %v1566_v16  ;;  %v1925_v30 = vld [vmem:[%s2782_s15 + $0x1] ss:$0 sm:$0xff] }
0x1610   :  { %v1590_v35 = vmul.f32 %v1896_v49, %v1582_v34  ;;  %v1597_v36 = vadd.f32 %v1897_v10, %v1589_v33 }
0x1612   :  { %v1598_v29 = vadd.f32 %v1897_v10, %v1590_v35 }
0x1614   :  { %v1599_v26 = vpack.c.bf16 %v1598_v29, %v1597_v36 }
0x1616   :  { %2139 = vmatmul.mubr.msk.bf16.vlgmr.msra.gmra.mrb[44].mxu1 %vm59_vm0, %v1599_v26 }
0x16e9   :  { %v1662_v13 = vpop.f32.mrb[44].mxu1 }
0x16ea   :  { %v1663_v44 = vadd.f32 %v1903_v43, %v1662_v13  ;;  %v2140_v45 = vpop.f32.mrb[45].mxu1 }
0x16eb   :  { %v1665_v46 = vpop.f32.mrb[46].mxu1 }
0x16ec   :  { %v1671_v48 = vmul.f32 0.70710677, %v1663_v44  ;;  %v1666_v50 = vadd.f32 %v1903_v43, %v1665_v46  ;;  %v2141_v51 = vpop.f32.mrb[47].mxu1  ;;  %v1669_v53 = vmul.f32 0.5, %v1663_v44 }
0x16ee   :  { %2245 = verf.f32 %v1671_v48  ;;  %v1672_v31 = vmul.f32 0.70710677, %v1666_v50  ;;  %v1670_v54 = vmul.f32 0.5, %v1666_v50 }
0x16f0   :  { %2247 = verf.f32 %v1672_v31 }
0x16f8   :  { %v2246_v15 = vpop.eup %2245 }
0x16f9   :  { %v1675_v32 = vadd.f32 1.0, %v2246_v15 }
0x16fa   :  { %v2248_v52 = vpop.eup %2247 }
0x16fb   :  { %v1676_v55 = vadd.f32 1.0, %v2248_v52  ;;  %v1677_v56 = vmul.f32 %v1675_v32, %v1669_v53 }
0x16fd   :  { %v1678_v57 = vmul.f32 %v1676_v55, %v1670_v54 }
0x16ff   :  { %v1679_v58 = vpack.c.bf16 %v1678_v57, %v1677_v56 }
0x1701   :  { %2151 = vmatmul.mubr.msk.bf16.vlgmr.msra.gmra.mrb[44].mxu0 %vm870_vm5, %v1679_v58 }
0x17d4   :  { %v1758_v60 = vpop.f32.mrb[44].mxu0 }
0x17d5   :  { %v1759_v61 = vadd.f32 %v1916_v59, %v1758_v60  ;;  %v2152_v62 = vpop.f32.mrb[45].mxu0 }
0x17d6   :  { %v1761_v63 = vpop.f32.mrb[46].mxu0 }
0x17d7   :  { %v1762_v0 = vadd.f32 %v1916_v59, %v1761_v63  ;;  %v2153_v2 = vpop.f32.mrb[47].mxu0  ;;  %v1765_v5 = vadd.f32 %v1759_v61, %v1597_v36 }
0x17d9   :  { %v1771_v6 = vsel %vm59_vm0, %v1765_v5, 0.0  ;;  %v1766_v1 = vadd.f32 %v1762_v0, %v1598_v29 }
0x17da   :  { %1772 = vadd.xlane.f32.xlu1 %v1771_v6 }
0x17db   :  { %v1774_v42 = vsel %vm59_vm0, %v1766_v1, 0.0 }
0x17dc   :  { %1775 = vadd.xlane.f32.xlu0 %v1774_v42 }
0x1867   :  { %v1773_v7 = vpop.xlane.xlu1 %1772 }
0x1868   :  { %v1777_v39 = vmul.f32 0.03125, %v1773_v7 }
0x1869   :  { %v1776_v8 = vpop.xlane.xlu0 %1775 }
0x186a   :  { %v1779_v9 = vsub.f32 %v1765_v5, %v1777_v39  ;;  %v1778_v11 = vmul.f32 0.03125, %v1776_v8 }
0x186c   :  { %v1780_v12 = vsub.f32 %v1766_v1, %v1778_v11  ;;  %v1781_v14 = vmul.f32 %v1779_v9, %v1779_v9 }
0x186e   :  { %v1783_v16 = vsel %vm59_vm0, %v1781_v14, 0.0  ;;  %v1782_v17 = vmul.f32 %v1780_v12, %v1780_v12 }
0x186f   :  { %1784 = vadd.xlane.f32.xlu1 %v1783_v16 }
0x1870   :  { %v1786_v18 = vsel %vm59_vm0, %v1782_v17, 0.0 }
0x1871   :  { %1787 = vadd.xlane.f32.xlu0 %v1786_v18 }
0x18fc   :  { %v1785_v19 = vpop.xlane.xlu1 %1784 }
0x18fd   :  { %v1789_v3 = vmul.f32 0.03125, %v1785_v19 }
0x18fe   :  { %v1788_v4 = vpop.xlane.xlu0 %1787 }
0x18ff   :  { %v1791_v20 = vadd.f32 1e-12, %v1789_v3  ;;  %v1790_v21 = vmul.f32 0.03125, %v1788_v4 }
0x1901   :  { %2249 = vrsqrt.f32 %v1791_v20  ;;  %v1792_v22 = vadd.f32 1e-12, %v1790_v21 }
0x1903   :  { %2251 = vrsqrt.f32 %v1792_v22 }
0x190b   :  { %v2250_v47 = vpop.eup %2249 }
0x190c   :  { %v1795_v23 = vmul.f32 %v2250_v47, %v1779_v9 }
0x190d   :  { %v2252_v24 = vpop.eup %2251 }
0x190e   :  { %v1796_v27 = vmul.f32 %v2252_v24, %v1780_v12  ;;  %v1803_v49 = vmul.f32 %v1924_v25, %v1795_v23 }
0x1910   :  { %v1804_v28 = vmul.f32 %v1924_v25, %v1796_v27  ;;  %v1811_v34 = vadd.f32 %v1925_v30, %v1803_v49 }
0x1912   :  { %v1812_v33 = vadd.f32 %v1925_v30, %v1804_v28 }
0x1914   :  { %v1814_v10 = vrot.slane %v1812_v33, 7 }
0x1916   :  { %v1817_v35 = vsel %vm1816_vm6, %v1811_v34, %v1814_v10 }
0x1917   :  { %1819 = vst.msk [vmem:[#allocation2] sm:$0x3] %vm1818_vm7, %v1817_v35 }
0x1918   :  { %2264 = shalt.err (!%p2261_p4)
}
0x1919   :  { %s2265_s15 = scalar_lea.hbm %s2783_s16, 32 }
0x191a   :  { %p2266_p5 = scmp.ne.s32.totalorder %s2783_s16, %s2265_s15  ;;  %p2269_p6 = scmp.lt.u32.totalorder %s2265_s15, %s2783_s16 }
0x191c   :  { %p2271_p7 = pnand %p2269_p6, %p2266_p5 }
0x191e   :  { %2274 = shalt.err (!%p2271_p7)
}
0x191f   :  { %1829 = dma.vmem_to_hbm [thread:$0]  %s1827_s24, 32, %s2783_s16, [#allocation3]  }
0x1920   :  { %2275 = dma.done.wait [#allocation3], 32  }
0x1921   :  { %2276 = vsyncadd [#allocation3], 4294967264 }
0x1922   :  { %1833 = vsyncpa [#allocation3], 1 }

</bundles_post_ra>
